<compile_context>
chip_gen: v5e
topology: v5e:2x2
jax: 0.10.0
libtpu: 0.0.40
codegen_flags: <defaults>
</compile_context>

<pallas_src>
import functools

import jax
import jax.numpy as jnp
from jax.experimental import pallas as pl
from jax.experimental.pallas import tpu as pltpu

_LANES = 128
_SUBLANES = 8


def _round_up(x, m):
    return ((x + m - 1) // m) * m


def _conv_stats_kernel(a_ref, b_ref, o_ref, st_ref):
    """One row tile of the per-phase matmul with fused BN partial statistics.

    a_ref : (tm, K)    bf16  sub-pixel im2col patch tile
    b_ref : (K, Cpad)  bf16  phase sub-weight, channel-padded to 128 lanes (resident)
    o_ref : (tm, Cpad) f32   conv output tile (lane-dense, unmasked stores)
    st_ref: (8, Cpad)  f32   row 0 = per-channel sum, row 1 = per-channel sum of squares
    """
    acc = jnp.dot(a_ref[...], b_ref[...], preferred_element_type=jnp.float32)
    o_ref[...] = acc
    st_ref[...] = jnp.zeros_like(st_ref)
    st_ref[0:1, :] = jnp.sum(acc, axis=0, keepdims=True)
    st_ref[1:2, :] = jnp.sum(acc * acc, axis=0, keepdims=True)


def _bn_relu_kernel(x_ref, scale_ref, shift_ref, o_ref, *, cout):
    """Row-tiled normalize + ReLU; writes the un-padded Cout channels directly."""
    y = jnp.maximum(x_ref[...] * scale_ref[...] + shift_ref[...], 0.0)
    o_ref[...] = y[:, :cout]


def relu_bn_convtranspose2d(x, w, *, stride, padding, output_padding=1, eps=1e-5,
                            row_tile=512):
    """x: (N, Cin, H, W) f32 NCHW; w: (Cin, Cout, kH, kW) (PyTorch ConvTranspose2d layout).

    Returns (N, Cout, H_out, W_out) f32, matching ConvTranspose2d -> BatchNorm2d
    (affine=False, training/batch statistics) -> ReLU.
    """
    N, Cin, H, W = x.shape
    Cin_w, Cout, kH, kW = w.shape
    assert Cin == Cin_w
    s, p, op = stride, padding, output_padding
    H_out = (H - 1) * s - 2 * p + kH + op
    W_out = (W - 1) * s - 2 * p + kW + op
    Cpad = _round_up(Cout, _LANES)

    compiler_params = pltpu.CompilerParams(
        dimension_semantics=("parallel",),
        vmem_limit_bytes=32 * 1024 * 1024,  # tiles are small; explicit headroom for v5e/v7x
    )

    # ---- static sub-pixel phase geometry (Python ints) ---------------------
    # Output index oh only receives taps kh with kh == (oh + p) (mod s); grouping
    # outputs by that residue removes the (s^2-1)/s^2 structural zeros of the
    # naive zero-insert formulation.
    def _phase_axis(out_len, k):
        axes = []
        for r in range(s):
            o0 = (r - p) % s
            if o0 >= out_len:
                axes.append((o0, 0, []))
                continue
            n = (out_len - 1 - o0) // s + 1
            taps = [(kt, (o0 + p - kt) // s) for kt in range(k) if kt % s == r]
            axes.append((o0, n, taps))
        return axes

    h_axes = _phase_axis(H_out, kH)
    w_axes = _phase_axis(W_out, kW)

    def _pad_amounts(axes, in_len):
        starts = [d for (_, n, taps) in axes for (_, d) in taps]
        stops = [d + n for (_, n, taps) in axes for (_, d) in taps]
        lo = max(0, -min(starts)) if starts else 0
        hi = max(0, max(stops) - in_len) if stops else 0
        return lo, hi

    pad_lo_h, pad_hi_h = _pad_amounts(h_axes, H)
    pad_lo_w, pad_hi_w = _pad_amounts(w_axes, W)

    x_nhwc = jnp.transpose(x, (0, 2, 3, 1))
    # bf16: native MXU dtype on v5e/v6e/v7x; halves HBM bytes of the patch matrix.
    x_pad = jnp.pad(
        x_nhwc, ((0, 0), (pad_lo_h, pad_hi_h), (pad_lo_w, pad_hi_w), (0, 0))
    ).astype(jnp.bfloat16)

    # ---- per-phase conv matmuls with fused BN sum / sum-of-squares ---------
    count = 0
    sum_c = jnp.zeros((Cpad,), jnp.float32)
    sq_c = jnp.zeros((Cpad,), jnp.float32)
    phase_results = []  # (oh0, ow0, nH, nW, M, Mp, tm, conv_out_padded)

    for rh in range(s):
        oh0, nH, taps_h = h_axes[rh]
        for rw in range(s):
            ow0, nW, taps_w = w_axes[rw]
            if nH <= 0 or nW <= 0:
                continue
            M = N * nH * nW
            count += M
            tm = row_tile if M >= row_tile else _round_up(M, _SUBLANES)
            Mp = _round_up(M, tm)
            grid = Mp // tm

            taps = [(kh, kw, dh + pad_lo_h, dw + pad_lo_w)
                    for (kh, dh) in taps_h for (kw, dw) in taps_w]
            if not taps:
                # kernel_size < stride: this phase is all zeros but still counts
                # toward the batch statistics and still gets normalized.
                o_pad = jnp.zeros((Mp, Cpad), jnp.float32)
                phase_results.append((oh0, ow0, nH, nW, M, Mp, tm, o_pad))
                continue

            K = len(taps) * Cin
            # Sub-pixel im2col: only the taps that touch this phase (no zero rows).
            # TODO(synk): gather these patches inside the kernel (taps grid axis or
            # manual DMA) instead of materializing the per-phase im2col in HBM.
            cols = [x_pad[:, hs:hs + nH, ws:ws + nW, :] for (_, _, hs, ws) in taps]
            a = jnp.concatenate(cols, axis=-1).reshape(M, K)
            if Mp != M:
                a = jnp.pad(a, ((0, Mp - M), (0, 0)))  # zero rows: no effect on stats

            b = jnp.stack([w[:, :, kh, kw] for (kh, kw, _, _) in taps], axis=0)
            b = b.reshape(K, Cout)
            b = jnp.pad(b, ((0, 0), (0, Cpad - Cout))).astype(jnp.bfloat16)

            o_pad, stats = pl.pallas_call(
                _conv_stats_kernel,
                out_shape=(
                    jax.ShapeDtypeStruct((Mp, Cpad), jnp.float32),
                    jax.ShapeDtypeStruct((grid * _SUBLANES, Cpad), jnp.float32),
                ),
                grid=(grid,),
                in_specs=[
                    pl.BlockSpec((tm, K), lambda i: (i, 0)),
                    pl.BlockSpec((K, Cpad), lambda i: (0, 0)),  # tiny weight, resident
                ],
                out_specs=(
                    pl.BlockSpec((tm, Cpad), lambda i: (i, 0)),
                    pl.BlockSpec((_SUBLANES, Cpad), lambda i: (i, 0)),
                ),
                compiler_params=compiler_params,
            )(a, b)

            st = stats.reshape(grid, _SUBLANES, Cpad)
            sum_c = sum_c + jnp.sum(st[:, 0, :], axis=0)
            sq_c = sq_c + jnp.sum(st[:, 1, :], axis=0)
            phase_results.append((oh0, ow0, nH, nW, M, Mp, tm, o_pad))

    # ---- BatchNorm2d(affine=False) training statistics (f32, biased var) ---
    inv_n = 1.0 / float(count)
    mean = sum_c * inv_n
    var = jnp.maximum(sq_c * inv_n - mean * mean, 0.0)
    scale = jax.lax.rsqrt(var + eps)
    shift = -mean * scale
    scale = scale.reshape(1, Cpad)
    shift = shift.reshape(1, Cpad)

    # ---- per-phase normalize + ReLU, then interleave the phases ------------
    out_nhwc = jnp.zeros((N, H_out, W_out, Cout), jnp.float32)
    bn_kernel = functools.partial(_bn_relu_kernel, cout=Cout)
    for (oh0, ow0, nH, nW, M, Mp, tm, o_pad) in phase_results:
        grid = Mp // tm
        y = pl.pallas_call(
            bn_kernel,
            out_shape=jax.ShapeDtypeStruct((Mp, Cout), jnp.float32),
            grid=(grid,),
            in_specs=[
                pl.BlockSpec((tm, Cpad), lambda i: (i, 0)),
                pl.BlockSpec((1, Cpad), lambda i: (0, 0)),
                pl.BlockSpec((1, Cpad), lambda i: (0, 0)),
            ],
            out_specs=pl.BlockSpec((tm, Cout), lambda i: (i, 0)),
            compiler_params=compiler_params,
        )(o_pad, scale, shift)
        img = y[:M].reshape(N, nH, nW, Cout)
        out_nhwc = out_nhwc.at[:, oh0::s, ow0::s, :].set(img)

    return jnp.transpose(out_nhwc, (0, 3, 1, 2))


if __name__ == "__main__":
    key = jax.random.PRNGKey(0)
    kx, kw = jax.random.split(key)

    # small shapes consistent with the module: n_in=4, n_out=8, k=3, stride=2, padding=1
    N, Cin, H, W = 2, 4, 16, 16
    Cout, k, s, p = 8, 3, 2, 1

    x = jax.random.normal(kx, (N, Cin, H, W), dtype=jnp.float32)
    bound = 1.0 / (Cout * k * k) ** 0.5
    # PyTorch ConvTranspose2d weight layout: (in_channels, out_channels, kH, kW)
    w = jax.random.uniform(kw, (Cin, Cout, k, k), jnp.float32, -bound, bound)

    fwd = jax.jit(functools.partial(relu_bn_convtranspose2d,
                                    stride=s, padding=p, output_padding=1))
    out = jax.block_until_ready(fwd(x, w))

    H_out = (H - 1) * s - 2 * p + k + 1
    W_out = (W - 1) * s - 2 * p + k + 1
    assert out.shape == (N, Cout, H_out, W_out)

    # pure-JAX reference (inputs bf16-rounded to match the kernel's MXU dtype)
    xq = x.astype(jnp.bfloat16).astype(jnp.float32)
    wq = w.astype(jnp.bfloat16).astype(jnp.float32)
    w_conv = jnp.flip(wq, axis=(2, 3)).transpose(1, 0, 2, 3)
    conv_ref = jax.lax.conv_general_dilated(
        xq, w_conv,
        window_strides=(1, 1),
        padding=((k - 1 - p, k - 1 - p + 1), (k - 1 - p, k - 1 - p + 1)),
        lhs_dilation=(s, s),
        dimension_numbers=("NCHW", "OIHW", "NCHW"),
        precision=jax.lax.Precision.HIGHEST,
    )
    mean = conv_ref.mean(axis=(0, 2, 3), keepdims=True)
    var = jnp.square(conv_ref - mean).mean(axis=(0, 2, 3), keepdims=True)
    ref = jnp.maximum((conv_ref - mean) * jax.lax.rsqrt(var + 1e-5), 0.0)

    err = float(jnp.max(jnp.abs(out - ref)))
    assert jnp.allclose(out, ref, atol=2e-3, rtol=2e-3), err
    print("KERNEL_OK")
</pallas_src>

<mosaic_0001>
module attributes {stable_mosaic.version = 11 : i64} {
  func.func @_conv_stats_kernel(%arg0: i32, %arg1: memref<512x16xbf16, #tpu.memory_space<vmem>>, %arg2: memref<16x128xbf16, #tpu.memory_space<vmem>>, %arg3: memref<512x128xf32, #tpu.memory_space<vmem>>, %arg4: memref<8x128xf32, #tpu.memory_space<vmem>>) attributes {dimension_semantics = [#tpu.dimension_semantics<parallel>], iteration_bounds = array<i64: 1>, scalar_prefetch = 0 : i64, scratch_operands = 0 : i64, tpu.core_type = #tpu.core_type<tc>, window_params = [{transform_indices = @transform_0, window_bounds = array<i64: 512, 16>}, {pipeline_mode = #tpu.pipeline_mode<synchronous>, transform_indices = @transform_1, window_bounds = array<i64: 16, 128>}, {transform_indices = @transform_2, window_bounds = array<i64: 512, 128>}, {transform_indices = @transform_3, window_bounds = array<i64: 8, 128>}]} {
    %c0 = arith.constant 0 : index
    %c0_0 = arith.constant 0 : index
    %0 = vector.load %arg1[%c0, %c0_0] : memref<512x16xbf16, #tpu.memory_space<vmem>>, vector<512x16xbf16>
    %c0_1 = arith.constant 0 : index
    %c0_2 = arith.constant 0 : index
    %1 = vector.load %arg2[%c0_1, %c0_2] : memref<16x128xbf16, #tpu.memory_space<vmem>>, vector<16x128xbf16>
    %cst = arith.constant dense<0.000000e+00> : vector<512x128xf32>
    %2 = tpu.matmul %0, %1, %cst {dimension_numbers = #tpu.dot_dimension_numbers<[1], [0], [0], [1], [0, 0, 1, 1], [], []>} : vector<512x16xbf16>, vector<16x128xbf16>, vector<512x128xf32> -> vector<512x128xf32>
    %c0_3 = arith.constant 0 : index
    %c0_4 = arith.constant 0 : index
    %3 = vector.load %arg3[%c0_3, %c0_4] : memref<512x128xf32, #tpu.memory_space<vmem>>, vector<512x128xf32>
    tpu.vector_store %arg3[%c0_3, %c0_4], %2 {strides = array<i32>} : memref<512x128xf32, #tpu.memory_space<vmem>>, vector<512x128xf32>,
    %cst_5 = arith.constant 0.000000e+00 : f32
    %4 = vector.broadcast %cst_5 : f32 to vector<8x128xf32>
    %c0_6 = arith.constant 0 : index
    %c0_7 = arith.constant 0 : index
    %5 = vector.load %arg4[%c0_6, %c0_7] : memref<8x128xf32, #tpu.memory_space<vmem>>, vector<8x128xf32>
    tpu.vector_store %arg4[%c0_6, %c0_7], %4 {strides = array<i32>} : memref<8x128xf32, #tpu.memory_space<vmem>>, vector<8x128xf32>,
    %cst_8 = arith.constant dense<0.000000e+00> : vector<128xf32>
    %6 = vector.multi_reduction <add>, %2, %cst_8 [0] : vector<512x128xf32> to vector<128xf32>
    %7 = vector.shape_cast %6 : vector<128xf32> to vector<1x128xf32>
    %c0_9 = arith.constant 0 : index
    %c0_10 = arith.constant 0 : index
    %8 = vector.load %arg4[%c0_9, %c0_10] : memref<8x128xf32, #tpu.memory_space<vmem>>, vector<1x128xf32>
    tpu.vector_store %arg4[%c0_9, %c0_10], %7 {strides = array<i32>} : memref<8x128xf32, #tpu.memory_space<vmem>>, vector<1x128xf32>,
    %9 = arith.mulf %2, %2 : vector<512x128xf32>
    %cst_11 = arith.constant dense<0.000000e+00> : vector<128xf32>
    %10 = vector.multi_reduction <add>, %9, %cst_11 [0] : vector<512x128xf32> to vector<128xf32>
    %11 = vector.shape_cast %10 : vector<128xf32> to vector<1x128xf32>
    %c1 = arith.constant 1 : index
    %c0_12 = arith.constant 0 : index
    %12 = vector.load %arg4[%c1, %c0_12] : memref<8x128xf32, #tpu.memory_space<vmem>>, vector<1x128xf32>
    tpu.vector_store %arg4[%c1, %c0_12], %11 {strides = array<i32>} : memref<8x128xf32, #tpu.memory_space<vmem>>, vector<1x128xf32>,
    return
  }
  func.func @transform_0(%arg0: i32) -> (i32, i32) {
    %c0_i32 = arith.constant 0 : i32
    %c0_i32_0 = arith.constant 0 : i32
    return %arg0, %c0_i32 : i32, i32
  }
  func.func @transform_1(%arg0: i32) -> (i32, i32) {
    %c0_i32 = arith.constant 0 : i32
    %c0_i32_0 = arith.constant 0 : i32
    %c0_i32_1 = arith.constant 0 : i32
    return %c0_i32, %c0_i32_0 : i32, i32
  }
  func.func @transform_2(%arg0: i32) -> (i32, i32) {
    %c0_i32 = arith.constant 0 : i32
    %c0_i32_0 = arith.constant 0 : i32
    return %arg0, %c0_i32 : i32, i32
  }
  func.func @transform_3(%arg0: i32) -> (i32, i32) {
    %c0_i32 = arith.constant 0 : i32
    %c0_i32_0 = arith.constant 0 : i32
    return %arg0, %c0_i32 : i32, i32
  }
}

module attributes {stable_mosaic.version = 11 : i64} {
  func.func @_conv_stats_kernel(%arg0: i32, %arg1: memref<512x8xbf16, #tpu.memory_space<vmem>>, %arg2: memref<8x128xbf16, #tpu.memory_space<vmem>>, %arg3: memref<512x128xf32, #tpu.memory_space<vmem>>, %arg4: memref<8x128xf32, #tpu.memory_space<vmem>>) attributes {dimension_semantics = [#tpu.dimension_semantics<parallel>], iteration_bounds = array<i64: 1>, scalar_prefetch = 0 : i64, scratch_operands = 0 : i64, tpu.core_type = #tpu.core_type<tc>, window_params = [{transform_indices = @transform_0, window_bounds = array<i64: 512, 8>}, {pipeline_mode = #tpu.pipeline_mode<synchronous>, transform_indices = @transform_1, window_bounds = array<i64: 8, 128>}, {transform_indices = @transform_2, window_bounds = array<i64: 512, 128>}, {transform_indices = @transform_3, window_bounds = array<i64: 8, 128>}]} {
    %c0 = arith.constant 0 : index
    %c0_0 = arith.constant 0 : index
    %0 = vector.load %arg1[%c0, %c0_0] : memref<512x8xbf16, #tpu.memory_space<vmem>>, vector<512x8xbf16>
    %c0_1 = arith.constant 0 : index
    %c0_2 = arith.constant 0 : index
    %1 = vector.load %arg2[%c0_1, %c0_2] : memref<8x128xbf16, #tpu.memory_space<vmem>>, vector<8x128xbf16>
    %cst = arith.constant dense<0.000000e+00> : vector<512x128xf32>
    %2 = tpu.matmul %0, %1, %cst {dimension_numbers = #tpu.dot_dimension_numbers<[1], [0], [0], [1], [0, 0, 1, 1], [], []>} : vector<512x8xbf16>, vector<8x128xbf16>, vector<512x128xf32> -> vector<512x128xf32>
    %c0_3 = arith.constant 0 : index
    %c0_4 = arith.constant 0 : index
    %3 = vector.load %arg3[%c0_3, %c0_4] : memref<512x128xf32, #tpu.memory_space<vmem>>, vector<512x128xf32>
    tpu.vector_store %arg3[%c0_3, %c0_4], %2 {strides = array<i32>} : memref<512x128xf32, #tpu.memory_space<vmem>>, vector<512x128xf32>,
    %cst_5 = arith.constant 0.000000e+00 : f32
    %4 = vector.broadcast %cst_5 : f32 to vector<8x128xf32>
    %c0_6 = arith.constant 0 : index
    %c0_7 = arith.constant 0 : index
    %5 = vector.load %arg4[%c0_6, %c0_7] : memref<8x128xf32, #tpu.memory_space<vmem>>, vector<8x128xf32>
    tpu.vector_store %arg4[%c0_6, %c0_7], %4 {strides = array<i32>} : memref<8x128xf32, #tpu.memory_space<vmem>>, vector<8x128xf32>,
    %cst_8 = arith.constant dense<0.000000e+00> : vector<128xf32>
    %6 = vector.multi_reduction <add>, %2, %cst_8 [0] : vector<512x128xf32> to vector<128xf32>
    %7 = vector.shape_cast %6 : vector<128xf32> to vector<1x128xf32>
    %c0_9 = arith.constant 0 : index
    %c0_10 = arith.constant 0 : index
    %8 = vector.load %arg4[%c0_9, %c0_10] : memref<8x128xf32, #tpu.memory_space<vmem>>, vector<1x128xf32>
    tpu.vector_store %arg4[%c0_9, %c0_10], %7 {strides = array<i32>} : memref<8x128xf32, #tpu.memory_space<vmem>>, vector<1x128xf32>,
    %9 = arith.mulf %2, %2 : vector<512x128xf32>
    %cst_11 = arith.constant dense<0.000000e+00> : vector<128xf32>
    %10 = vector.multi_reduction <add>, %9, %cst_11 [0] : vector<512x128xf32> to vector<128xf32>
    %11 = vector.shape_cast %10 : vector<128xf32> to vector<1x128xf32>
    %c1 = arith.constant 1 : index
    %c0_12 = arith.constant 0 : index
    %12 = vector.load %arg4[%c1, %c0_12] : memref<8x128xf32, #tpu.memory_space<vmem>>, vector<1x128xf32>
    tpu.vector_store %arg4[%c1, %c0_12], %11 {strides = array<i32>} : memref<8x128xf32, #tpu.memory_space<vmem>>, vector<1x128xf32>,
    return
  }
  func.func @transform_0(%arg0: i32) -> (i32, i32) {
    %c0_i32 = arith.constant 0 : i32
    %c0_i32_0 = arith.constant 0 : i32
    return %arg0, %c0_i32 : i32, i32
  }
  func.func @transform_1(%arg0: i32) -> (i32, i32) {
    %c0_i32 = arith.constant 0 : i32
    %c0_i32_0 = arith.constant 0 : i32
    %c0_i32_1 = arith.constant 0 : i32
    return %c0_i32, %c0_i32_0 : i32, i32
  }
  func.func @transform_2(%arg0: i32) -> (i32, i32) {
    %c0_i32 = arith.constant 0 : i32
    %c0_i32_0 = arith.constant 0 : i32
    return %arg0, %c0_i32 : i32, i32
  }
  func.func @transform_3(%arg0: i32) -> (i32, i32) {
    %c0_i32 = arith.constant 0 : i32
    %c0_i32_0 = arith.constant 0 : i32
    return %arg0, %c0_i32 : i32, i32
  }
}

module attributes {stable_mosaic.version = 11 : i64} {
  func.func @_conv_stats_kernel(%arg0: i32, %arg1: memref<512x4xbf16, #tpu.memory_space<vmem>>, %arg2: memref<4x128xbf16, #tpu.memory_space<vmem>>, %arg3: memref<512x128xf32, #tpu.memory_space<vmem>>, %arg4: memref<8x128xf32, #tpu.memory_space<vmem>>) attributes {dimension_semantics = [#tpu.dimension_semantics<parallel>], iteration_bounds = array<i64: 1>, scalar_prefetch = 0 : i64, scratch_operands = 0 : i64, tpu.core_type = #tpu.core_type<tc>, window_params = [{transform_indices = @transform_0, window_bounds = array<i64: 512, 4>}, {pipeline_mode = #tpu.pipeline_mode<synchronous>, transform_indices = @transform_1, window_bounds = array<i64: 4, 128>}, {transform_indices = @transform_2, window_bounds = array<i64: 512, 128>}, {transform_indices = @transform_3, window_bounds = array<i64: 8, 128>}]} {
    %c0 = arith.constant 0 : index
    %c0_0 = arith.constant 0 : index
    %0 = vector.load %arg1[%c0, %c0_0] : memref<512x4xbf16, #tpu.memory_space<vmem>>, vector<512x4xbf16>
    %c0_1 = arith.constant 0 : index
    %c0_2 = arith.constant 0 : index
    %1 = vector.load %arg2[%c0_1, %c0_2] : memref<4x128xbf16, #tpu.memory_space<vmem>>, vector<4x128xbf16>
    %cst = arith.constant dense<0.000000e+00> : vector<512x128xf32>
    %2 = tpu.matmul %0, %1, %cst {dimension_numbers = #tpu.dot_dimension_numbers<[1], [0], [0], [1], [0, 0, 1, 1], [], []>} : vector<512x4xbf16>, vector<4x128xbf16>, vector<512x128xf32> -> vector<512x128xf32>
    %c0_3 = arith.constant 0 : index
    %c0_4 = arith.constant 0 : index
    %3 = vector.load %arg3[%c0_3, %c0_4] : memref<512x128xf32, #tpu.memory_space<vmem>>, vector<512x128xf32>
    tpu.vector_store %arg3[%c0_3, %c0_4], %2 {strides = array<i32>} : memref<512x128xf32, #tpu.memory_space<vmem>>, vector<512x128xf32>,
    %cst_5 = arith.constant 0.000000e+00 : f32
    %4 = vector.broadcast %cst_5 : f32 to vector<8x128xf32>
    %c0_6 = arith.constant 0 : index
    %c0_7 = arith.constant 0 : index
    %5 = vector.load %arg4[%c0_6, %c0_7] : memref<8x128xf32, #tpu.memory_space<vmem>>, vector<8x128xf32>
    tpu.vector_store %arg4[%c0_6, %c0_7], %4 {strides = array<i32>} : memref<8x128xf32, #tpu.memory_space<vmem>>, vector<8x128xf32>,
    %cst_8 = arith.constant dense<0.000000e+00> : vector<128xf32>
    %6 = vector.multi_reduction <add>, %2, %cst_8 [0] : vector<512x128xf32> to vector<128xf32>
    %7 = vector.shape_cast %6 : vector<128xf32> to vector<1x128xf32>
    %c0_9 = arith.constant 0 : index
    %c0_10 = arith.constant 0 : index
    %8 = vector.load %arg4[%c0_9, %c0_10] : memref<8x128xf32, #tpu.memory_space<vmem>>, vector<1x128xf32>
    tpu.vector_store %arg4[%c0_9, %c0_10], %7 {strides = array<i32>} : memref<8x128xf32, #tpu.memory_space<vmem>>, vector<1x128xf32>,
    %9 = arith.mulf %2, %2 : vector<512x128xf32>
    %cst_11 = arith.constant dense<0.000000e+00> : vector<128xf32>
    %10 = vector.multi_reduction <add>, %9, %cst_11 [0] : vector<512x128xf32> to vector<128xf32>
    %11 = vector.shape_cast %10 : vector<128xf32> to vector<1x128xf32>
    %c1 = arith.constant 1 : index
    %c0_12 = arith.constant 0 : index
    %12 = vector.load %arg4[%c1, %c0_12] : memref<8x128xf32, #tpu.memory_space<vmem>>, vector<1x128xf32>
    tpu.vector_store %arg4[%c1, %c0_12], %11 {strides = array<i32>} : memref<8x128xf32, #tpu.memory_space<vmem>>, vector<1x128xf32>,
    return
  }
  func.func @transform_0(%arg0: i32) -> (i32, i32) {
    %c0_i32 = arith.constant 0 : i32
    %c0_i32_0 = arith.constant 0 : i32
    return %arg0, %c0_i32 : i32, i32
  }
  func.func @transform_1(%arg0: i32) -> (i32, i32) {
    %c0_i32 = arith.constant 0 : i32
    %c0_i32_0 = arith.constant 0 : i32
    %c0_i32_1 = arith.constant 0 : i32
    return %c0_i32, %c0_i32_0 : i32, i32
  }
  func.func @transform_2(%arg0: i32) -> (i32, i32) {
    %c0_i32 = arith.constant 0 : i32
    %c0_i32_0 = arith.constant 0 : i32
    return %arg0, %c0_i32 : i32, i32
  }
  func.func @transform_3(%arg0: i32) -> (i32, i32) {
    %c0_i32 = arith.constant 0 : i32
    %c0_i32_0 = arith.constant 0 : i32
    return %arg0, %c0_i32 : i32, i32
  }
}

module attributes {stable_mosaic.version = 11 : i64} {
  func.func @_bn_relu_kernel(%arg0: i32, %arg1: memref<512x128xf32, #tpu.memory_space<vmem>>, %arg2: memref<1x128xf32, #tpu.memory_space<vmem>>, %arg3: memref<1x128xf32, #tpu.memory_space<vmem>>, %arg4: memref<512x8xf32, #tpu.memory_space<vmem>>) attributes {dimension_semantics = [#tpu.dimension_semantics<parallel>], iteration_bounds = array<i64: 1>, scalar_prefetch = 0 : i64, scratch_operands = 0 : i64, tpu.core_type = #tpu.core_type<tc>, window_params = [{transform_indices = @transform_0, window_bounds = array<i64: 512, 128>}, {pipeline_mode = #tpu.pipeline_mode<synchronous>, transform_indices = @transform_1, window_bounds = array<i64: 1, 128>}, {pipeline_mode = #tpu.pipeline_mode<synchronous>, transform_indices = @transform_2, window_bounds = array<i64: 1, 128>}, {transform_indices = @transform_3, window_bounds = array<i64: 512, 8>}]} {
    %c0 = arith.constant 0 : index
    %c0_0 = arith.constant 0 : index
    %0 = vector.load %arg1[%c0, %c0_0] : memref<512x128xf32, #tpu.memory_space<vmem>>, vector<512x128xf32>
    %c0_1 = arith.constant 0 : index
    %c0_2 = arith.constant 0 : index
    %1 = vector.load %arg2[%c0_1, %c0_2] : memref<1x128xf32, #tpu.memory_space<vmem>>, vector<1x128xf32>
    %2 = vector.broadcast %1 : vector<1x128xf32> to vector<512x128xf32>
    %3 = arith.mulf %0, %2 : vector<512x128xf32>
    %c0_3 = arith.constant 0 : index
    %c0_4 = arith.constant 0 : index
    %4 = vector.load %arg3[%c0_3, %c0_4] : memref<1x128xf32, #tpu.memory_space<vmem>>, vector<1x128xf32>
    %5 = vector.broadcast %4 : vector<1x128xf32> to vector<512x128xf32>
    %6 = arith.addf %3, %5 : vector<512x128xf32>
    %cst = arith.constant 0.000000e+00 : f32
    %7 = vector.broadcast %cst : f32 to vector<512x128xf32>
    %8 = arith.maximumf %6, %7 : vector<512x128xf32>
    %9 = vector.extract_strided_slice %8 {offsets = [0, 0], sizes = [512, 8], strides = [1, 1]} : vector<512x128xf32> to vector<512x8xf32>
    %c0_5 = arith.constant 0 : index
    %c0_6 = arith.constant 0 : index
    %10 = vector.load %arg4[%c0_5, %c0_6] : memref<512x8xf32, #tpu.memory_space<vmem>>, vector<512x8xf32>
    tpu.vector_store %arg4[%c0_5, %c0_6], %9 {strides = array<i32>} : memref<512x8xf32, #tpu.memory_space<vmem>>, vector<512x8xf32>,
    return
  }
  func.func @transform_0(%arg0: i32) -> (i32, i32) {
    %c0_i32 = arith.constant 0 : i32
    %c0_i32_0 = arith.constant 0 : i32
    return %arg0, %c0_i32 : i32, i32
  }
  func.func @transform_1(%arg0: i32) -> (i32, i32) {
    %c0_i32 = arith.constant 0 : i32
    %c0_i32_0 = arith.constant 0 : i32
    %c0_i32_1 = arith.constant 0 : i32
    return %c0_i32, %c0_i32_0 : i32, i32
  }
  func.func @transform_2(%arg0: i32) -> (i32, i32) {
    %c0_i32 = arith.constant 0 : i32
    %c0_i32_0 = arith.constant 0 : i32
    %c0_i32_1 = arith.constant 0 : i32
    return %c0_i32, %c0_i32_0 : i32, i32
  }
  func.func @transform_3(%arg0: i32) -> (i32, i32) {
    %c0_i32 = arith.constant 0 : i32
    %c0_i32_0 = arith.constant 0 : i32
    return %arg0, %c0_i32 : i32, i32
  }
}

</mosaic_0001>

<bundles_post_ra>
// kernel: relu_bn_convtranspose2d.15
= control target key start
LH: loop header
LB: loop body
LE: loop exit
PB: predicated region body
PF: predicated region fallthrough
CT: control target
= control target key end

     0   :  { %vm278_vm0 = vcmask 64512   ;;  %s958_s0 = inlined_call_operand.vmem [shape: f32[512,128], index: 0, kind: input, shape index: {}]   ;;  %s959_s1 = inlined_call_operand.vmem [shape: f32[1,128], index: 1, kind: input, shape index: {}]   ;;  %s960_s2 = inlined_call_operand.vmem [shape: f32[1,128], index: 2, kind: input, shape index: {}]   ;;  %s961_s3 = inlined_call_operand.vmem [shape: f32[512,8], index: 3, kind: output, shape index: {}]  }
   0x1   :  { %v14_v0 = vld [vmem:[%s958_s0] sm:$0xff]  ;;  %v15_v3 = vld [vmem:[%s958_s0 + $0x8] sm:$0xff]  ;;  %v16_v6 = vld [vmem:[%s958_s0 + $0x10] sm:$0xff] }
   0x2   :  { %v375_v1 = vld [vmem:[%s959_s1] ss:$0 sm:$0xff]  ;;  %v17_v7 = vld [vmem:[%s958_s0 + $0x18] sm:$0xff]  ;;  %v19_v12 = vld [vmem:[%s958_s0 + $0x28] sm:$0xff] }
   0x3   :  { %v380_v2 = vld [vmem:[%s960_s2] ss:$0 sm:$0xff]  ;;  %v82_v4 = vmul.f32 %v375_v1, %v14_v0  ;;  %v83_v5 = vmul.f32 %v375_v1, %v15_v3  ;;  %v84_v9 = vmul.f32 %v375_v1, %v16_v6  ;;  %v85_v10 = vmul.f32 %v375_v1, %v17_v7  ;;  %v20_v13 = vld [vmem:[%s958_s0 + $0x30] sm:$0xff]  ;;  %v21_v14 = vld [vmem:[%s958_s0 + $0x38] sm:$0xff] }
   0x4   :  { %v18_v8 = vld [vmem:[%s958_s0 + $0x20] sm:$0xff]  ;;  %v87_v17 = vmul.f32 %v375_v1, %v19_v12  ;;  %v88_v18 = vmul.f32 %v375_v1, %v20_v13  ;;  %v89_v22 = vmul.f32 %v375_v1, %v21_v14  ;;  %v23_v24 = vld [vmem:[%s958_s0 + $0x48] sm:$0xff]  ;;  %v24_v29 = vld [vmem:[%s958_s0 + $0x50] sm:$0xff] }
   0x5   :  { %v86_v11 = vmul.f32 %v375_v1, %v18_v8  ;;  %v150_v15 = vadd.f32 %v380_v2, %v82_v4  ;;  %v151_v16 = vadd.f32 %v380_v2, %v83_v5  ;;  %v152_v19 = vadd.f32 %v380_v2, %v84_v9  ;;  %v22_v23 = vld [vmem:[%s958_s0 + $0x40] sm:$0xff]  ;;  %v25_v30 = vld [vmem:[%s958_s0 + $0x58] sm:$0xff]  ;;  %v27_v35 = vld [vmem:[%s958_s0 + $0x68] sm:$0xff] }
   0x6   :  { %v153_v20 = vadd.f32 %v380_v2, %v85_v10  ;;  %v155_v27 = vadd.f32 %v380_v2, %v87_v17  ;;  %v156_v28 = vadd.f32 %v380_v2, %v88_v18  ;;  %v26_v31 = vld [vmem:[%s958_s0 + $0x60] sm:$0xff]  ;;  %v157_v34 = vadd.f32 %v380_v2, %v89_v22  ;;  %v28_v36 = vld [vmem:[%s958_s0 + $0x70] sm:$0xff]  ;;  %v29_v41 = vld [vmem:[%s958_s0 + $0x78] sm:$0xff] }
   0x7   :  { %v154_v21 = vadd.f32 %v380_v2, %v86_v11  ;;  %v214_v25 = vmax.f32 %v150_v15, 0.0  ;;  %v215_v26 = vmax.f32 %v151_v16, 0.0  ;;  %v216_v32 = vmax.f32 %v152_v19, 0.0  ;;  %v30_v54 = vld [vmem:[%s958_s0 + $0x80] sm:$0xff]  ;;  %v31_v55 = vld [vmem:[%s958_s0 + $0x88] sm:$0xff]  ;;  %v32_v58 = vld [vmem:[%s958_s0 + $0x90] sm:$0xff] }
   0x8   :  { %v217_v33 = vmax.f32 %v153_v20, 0.0  ;;  %v219_v38 = vmax.f32 %v155_v27, 0.0  ;;  %v90_v39 = vmul.f32 %v375_v1, %v22_v23  ;;  %v91_v40 = vmul.f32 %v375_v1, %v23_v24  ;;  %v33_v59 = vld [vmem:[%s958_s0 + $0x98] sm:$0xff]  ;;  %v34_v62 = vld [vmem:[%s958_s0 + $0xa0] sm:$0xff]  ;;  %v35_v5 = vld [vmem:[%s958_s0 + $0xa8] sm:$0xff] }
   0x9   :  { %279 = vst.msk [vmem:[%s961_s3] sm:$0xff] %vm278_vm0, %v214_v25  ;;  %v218_v37 = vmax.f32 %v154_v21, 0.0  ;;  %v220_v42 = vmax.f32 %v156_v28, 0.0  ;;  %v92_v43 = vmul.f32 %v375_v1, %v24_v29  ;;  %v93_v44 = vmul.f32 %v375_v1, %v25_v30  ;;  %v36_v10 = vld [vmem:[%s958_s0 + $0xb0] sm:$0xff]  ;;  %v37_v14 = vld [vmem:[%s958_s0 + $0xb8] sm:$0xff]  ;;  %v38_v18 = vld [vmem:[%s958_s0 + $0xc0] sm:$0xff] }
   0xa   :  { %280 = vst.msk [vmem:[%s961_s3 + $0x8] sm:$0xff] %vm278_vm0, %v215_v26  ;;  %v94_v45 = vmul.f32 %v375_v1, %v26_v31  ;;  %v158_v46 = vadd.f32 %v380_v2, %v90_v39  ;;  %v159_v47 = vadd.f32 %v380_v2, %v91_v40  ;;  %v95_v48 = vmul.f32 %v375_v1, %v27_v35  ;;  %v39_v22 = vld [vmem:[%s958_s0 + $0xc8] sm:$0xff]  ;;  %v40_v26 = vld [vmem:[%s958_s0 + $0xd0] sm:$0xff]  ;;  %v41_v30 = vld [vmem:[%s958_s0 + $0xd8] sm:$0xff] }
   0xb   :  { %281 = vst.msk [vmem:[%s961_s3 + $0x10] sm:$0xff] %vm278_vm0, %v216_v32  ;;  %v96_v49 = vmul.f32 %v375_v1, %v28_v36  ;;  %v221_v50 = vmax.f32 %v157_v34, 0.0  ;;  %v160_v51 = vadd.f32 %v380_v2, %v92_v43  ;;  %v161_v52 = vadd.f32 %v380_v2, %v93_v44  ;;  %v42_v34 = vld [vmem:[%s958_s0 + $0xe0] sm:$0xff] }
   0xc   :  { %282 = vst.msk [vmem:[%s961_s3 + $0x18] sm:$0xff] %vm278_vm0, %v217_v33  ;;  %v97_v53 = vmul.f32 %v375_v1, %v29_v41  ;;  %v222_v56 = vmax.f32 %v158_v46, 0.0  ;;  %v162_v57 = vadd.f32 %v380_v2, %v94_v45  ;;  %v223_v60 = vmax.f32 %v159_v47, 0.0  ;;  %v45_v46 = vld [vmem:[%s958_s0 + $0xf8] sm:$0xff] }
   0xd   :  { %283 = vst.msk [vmem:[%s961_s3 + $0x20] sm:$0xff] %vm278_vm0, %v218_v37  ;;  %v163_v61 = vadd.f32 %v380_v2, %v95_v48  ;;  %v224_v63 = vmax.f32 %v160_v51, 0.0  ;;  %v164_v0 = vadd.f32 %v380_v2, %v96_v49  ;;  %v98_v3 = vmul.f32 %v375_v1, %v30_v54  ;;  %v47_v54 = vld [vmem:[%s958_s0 + $0x108] sm:$0xff] }
   0xe   :  { %284 = vst.msk [vmem:[%s961_s3 + $0x28] sm:$0xff] %vm278_vm0, %v219_v38  ;;  %v99_v4 = vmul.f32 %v375_v1, %v31_v55  ;;  %v225_v6 = vmax.f32 %v161_v52, 0.0  ;;  %v165_v7 = vadd.f32 %v380_v2, %v97_v53  ;;  %v100_v8 = vmul.f32 %v375_v1, %v32_v58  ;;  %v43_v38 = vld [vmem:[%s958_s0 + $0xe8] sm:$0xff]  ;;  %v48_v58 = vld [vmem:[%s958_s0 + $0x110] sm:$0xff] }
   0xf   :  { %285 = vst.msk [vmem:[%s961_s3 + $0x30] sm:$0xff] %vm278_vm0, %v220_v42  ;;  %v101_v9 = vmul.f32 %v375_v1, %v33_v59  ;;  %v226_v11 = vmax.f32 %v162_v57, 0.0  ;;  %v166_v12 = vadd.f32 %v380_v2, %v98_v3  ;;  %v102_v13 = vmul.f32 %v375_v1, %v34_v62  ;;  %v44_v42 = vld [vmem:[%s958_s0 + $0xf0] sm:$0xff]  ;;  %v49_v62 = vld [vmem:[%s958_s0 + $0x118] sm:$0xff] }
  0x10   :  { %286 = vst.msk [vmem:[%s961_s3 + $0x38] sm:$0xff] %vm278_vm0, %v221_v50  ;;  %v227_v15 = vmax.f32 %v163_v61, 0.0  ;;  %v167_v16 = vadd.f32 %v380_v2, %v99_v4  ;;  %v103_v17 = vmul.f32 %v375_v1, %v35_v5  ;;  %v228_v19 = vmax.f32 %v164_v0, 0.0  ;;  %v46_v50 = vld [vmem:[%s958_s0 + $0x100] sm:$0xff] }
  0x11   :  { %287 = vst.msk [vmem:[%s961_s3 + $0x40] sm:$0xff] %vm278_vm0, %v222_v56  ;;  %v168_v20 = vadd.f32 %v380_v2, %v100_v8  ;;  %v104_v21 = vmul.f32 %v375_v1, %v36_v10  ;;  %v229_v23 = vmax.f32 %v165_v7, 0.0  ;;  %v169_v24 = vadd.f32 %v380_v2, %v101_v9  ;;  %v50_v4 = vld [vmem:[%s958_s0 + $0x120] sm:$0xff]  ;;  %v51_v8 = vld [vmem:[%s958_s0 + $0x128] sm:$0xff] }
  0x12   :  { %288 = vst.msk [vmem:[%s961_s3 + $0x48] sm:$0xff] %vm278_vm0, %v223_v60  ;;  %v105_v25 = vmul.f32 %v375_v1, %v37_v14  ;;  %v230_v27 = vmax.f32 %v166_v12, 0.0  ;;  %v170_v28 = vadd.f32 %v380_v2, %v102_v13  ;;  %v106_v29 = vmul.f32 %v375_v1, %v38_v18  ;;  %v52_v12 = vld [vmem:[%s958_s0 + $0x130] sm:$0xff] }
  0x13   :  { %289 = vst.msk [vmem:[%s961_s3 + $0x50] sm:$0xff] %vm278_vm0, %v224_v63  ;;  %v231_v31 = vmax.f32 %v167_v16, 0.0  ;;  %v171_v32 = vadd.f32 %v380_v2, %v103_v17  ;;  %v107_v33 = vmul.f32 %v375_v1, %v39_v22  ;;  %v232_v35 = vmax.f32 %v168_v20, 0.0  ;;  %v53_v16 = vld [vmem:[%s958_s0 + $0x138] sm:$0xff]  ;;  %v54_v20 = vld [vmem:[%s958_s0 + $0x140] sm:$0xff] }
  0x14   :  { %290 = vst.msk [vmem:[%s961_s3 + $0x58] sm:$0xff] %vm278_vm0, %v225_v6  ;;  %v172_v36 = vadd.f32 %v380_v2, %v104_v21  ;;  %v108_v37 = vmul.f32 %v375_v1, %v40_v26  ;;  %v233_v39 = vmax.f32 %v169_v24, 0.0  ;;  %v173_v40 = vadd.f32 %v380_v2, %v105_v25  ;;  %v55_v24 = vld [vmem:[%s958_s0 + $0x148] sm:$0xff] }
  0x15   :  { %291 = vst.msk [vmem:[%s961_s3 + $0x60] sm:$0xff] %vm278_vm0, %v226_v11  ;;  %v109_v41 = vmul.f32 %v375_v1, %v41_v30  ;;  %v234_v43 = vmax.f32 %v170_v28, 0.0  ;;  %v174_v44 = vadd.f32 %v380_v2, %v106_v29  ;;  %v110_v45 = vmul.f32 %v375_v1, %v42_v34  ;;  %v56_v28 = vld [vmem:[%s958_s0 + $0x150] sm:$0xff] }
  0x16   :  { %292 = vst.msk [vmem:[%s961_s3 + $0x68] sm:$0xff] %vm278_vm0, %v227_v15  ;;  %v235_v47 = vmax.f32 %v171_v32, 0.0  ;;  %v175_v48 = vadd.f32 %v380_v2, %v107_v33  ;;  %v111_v49 = vmul.f32 %v375_v1, %v43_v38  ;;  %v236_v51 = vmax.f32 %v172_v36, 0.0  ;;  %v57_v32 = vld [vmem:[%s958_s0 + $0x158] sm:$0xff]  ;;  %v58_v36 = vld [vmem:[%s958_s0 + $0x160] sm:$0xff] }
  0x17   :  { %293 = vst.msk [vmem:[%s961_s3 + $0x70] sm:$0xff] %vm278_vm0, %v228_v19  ;;  %v176_v52 = vadd.f32 %v380_v2, %v108_v37  ;;  %v112_v53 = vmul.f32 %v375_v1, %v44_v42  ;;  %v237_v55 = vmax.f32 %v173_v40, 0.0  ;;  %v177_v56 = vadd.f32 %v380_v2, %v109_v41  ;;  %v59_v40 = vld [vmem:[%s958_s0 + $0x168] sm:$0xff] }
  0x18   :  { %294 = vst.msk [vmem:[%s961_s3 + $0x78] sm:$0xff] %vm278_vm0, %v229_v23  ;;  %v113_v57 = vmul.f32 %v375_v1, %v45_v46  ;;  %v238_v59 = vmax.f32 %v174_v44, 0.0  ;;  %v178_v60 = vadd.f32 %v380_v2, %v110_v45  ;;  %v114_v61 = vmul.f32 %v375_v1, %v46_v50  ;;  %v60_v44 = vld [vmem:[%s958_s0 + $0x170] sm:$0xff] }
  0x19   :  { %295 = vst.msk [vmem:[%s961_s3 + $0x80] sm:$0xff] %vm278_vm0, %v230_v27  ;;  %v239_v63 = vmax.f32 %v175_v48, 0.0  ;;  %v179_v0 = vadd.f32 %v380_v2, %v111_v49  ;;  %v115_v3 = vmul.f32 %v375_v1, %v47_v54  ;;  %v240_v5 = vmax.f32 %v176_v52, 0.0  ;;  %v61_v48 = vld [vmem:[%s958_s0 + $0x178] sm:$0xff]  ;;  %v62_v52 = vld [vmem:[%s958_s0 + $0x180] sm:$0xff] }
  0x1a   :  { %296 = vst.msk [vmem:[%s961_s3 + $0x88] sm:$0xff] %vm278_vm0, %v231_v31  ;;  %v180_v6 = vadd.f32 %v380_v2, %v112_v53  ;;  %v116_v7 = vmul.f32 %v375_v1, %v48_v58  ;;  %v241_v9 = vmax.f32 %v177_v56, 0.0  ;;  %v181_v10 = vadd.f32 %v380_v2, %v113_v57  ;;  %v63_v56 = vld [vmem:[%s958_s0 + $0x188] sm:$0xff] }
  0x1b   :  { %297 = vst.msk [vmem:[%s961_s3 + $0x90] sm:$0xff] %vm278_vm0, %v232_v35  ;;  %v117_v11 = vmul.f32 %v375_v1, %v49_v62  ;;  %v242_v13 = vmax.f32 %v178_v60, 0.0  ;;  %v182_v14 = vadd.f32 %v380_v2, %v114_v61  ;;  %v118_v15 = vmul.f32 %v375_v1, %v50_v4  ;;  %v64_v60 = vld [vmem:[%s958_s0 + $0x190] sm:$0xff] }
  0x1c   :  { %298 = vst.msk [vmem:[%s961_s3 + $0x98] sm:$0xff] %vm278_vm0, %v233_v39  ;;  %v243_v17 = vmax.f32 %v179_v0, 0.0  ;;  %v183_v18 = vadd.f32 %v380_v2, %v115_v3  ;;  %v119_v19 = vmul.f32 %v375_v1, %v51_v8  ;;  %v244_v21 = vmax.f32 %v180_v6, 0.0  ;;  %v65_v0 = vld [vmem:[%s958_s0 + $0x198] sm:$0xff] }
  0x1d   :  { %299 = vst.msk [vmem:[%s961_s3 + $0xa0] sm:$0xff] %vm278_vm0, %v234_v43  ;;  %v184_v22 = vadd.f32 %v380_v2, %v116_v7  ;;  %v120_v23 = vmul.f32 %v375_v1, %v52_v12  ;;  %v245_v25 = vmax.f32 %v181_v10, 0.0  ;;  %v185_v26 = vadd.f32 %v380_v2, %v117_v11  ;;  %v77_v3 = vld [vmem:[%s958_s0 + $0x1f8] sm:$0xff]  ;;  %v66_v7 = vld [vmem:[%s958_s0 + $0x1a0] sm:$0xff]  ;;  %v67_v11 = vld [vmem:[%s958_s0 + $0x1a8] sm:$0xff] }
  0x1e   :  { %300 = vst.msk [vmem:[%s961_s3 + $0xa8] sm:$0xff] %vm278_vm0, %v235_v47  ;;  %v121_v27 = vmul.f32 %v375_v1, %v53_v16  ;;  %v246_v29 = vmax.f32 %v182_v14, 0.0  ;;  %v186_v30 = vadd.f32 %v380_v2, %v118_v15  ;;  %v122_v31 = vmul.f32 %v375_v1, %v54_v20  ;;  %v68_v15 = vld [vmem:[%s958_s0 + $0x1b0] sm:$0xff]  ;;  %v69_v20 = vld [vmem:[%s958_s0 + $0x1b8] sm:$0xff] }
  0x1f   :  { %301 = vst.msk [vmem:[%s961_s3 + $0xb0] sm:$0xff] %vm278_vm0, %v236_v51  ;;  %v247_v33 = vmax.f32 %v183_v18, 0.0  ;;  %v187_v34 = vadd.f32 %v380_v2, %v119_v19  ;;  %v123_v35 = vmul.f32 %v375_v1, %v55_v24  ;;  %v248_v37 = vmax.f32 %v184_v22, 0.0  ;;  %v70_v24 = vld [vmem:[%s958_s0 + $0x1c0] sm:$0xff] }
  0x20   :  { %302 = vst.msk [vmem:[%s961_s3 + $0xb8] sm:$0xff] %vm278_vm0, %v237_v55  ;;  %v188_v38 = vadd.f32 %v380_v2, %v120_v23  ;;  %v124_v39 = vmul.f32 %v375_v1, %v56_v28  ;;  %v249_v41 = vmax.f32 %v185_v26, 0.0  ;;  %v189_v42 = vadd.f32 %v380_v2, %v121_v27 }
  0x21   :  { %303 = vst.msk [vmem:[%s961_s3 + $0xc0] sm:$0xff] %vm278_vm0, %v238_v59  ;;  %v125_v43 = vmul.f32 %v375_v1, %v57_v32  ;;  %v250_v45 = vmax.f32 %v186_v30, 0.0  ;;  %v190_v46 = vadd.f32 %v380_v2, %v122_v31  ;;  %v126_v47 = vmul.f32 %v375_v1, %v58_v36 }
  0x22   :  { %304 = vst.msk [vmem:[%s961_s3 + $0xc8] sm:$0xff] %vm278_vm0, %v239_v63  ;;  %v251_v49 = vmax.f32 %v187_v34, 0.0  ;;  %v191_v50 = vadd.f32 %v380_v2, %v123_v35  ;;  %v127_v51 = vmul.f32 %v375_v1, %v59_v40  ;;  %v252_v53 = vmax.f32 %v188_v38, 0.0 }
  0x23   :  { %305 = vst.msk [vmem:[%s961_s3 + $0xd0] sm:$0xff] %vm278_vm0, %v240_v5  ;;  %v192_v54 = vadd.f32 %v380_v2, %v124_v39  ;;  %v128_v55 = vmul.f32 %v375_v1, %v60_v44  ;;  %v253_v57 = vmax.f32 %v189_v42, 0.0  ;;  %v193_v58 = vadd.f32 %v380_v2, %v125_v43 }
  0x24   :  { %306 = vst.msk [vmem:[%s961_s3 + $0xd8] sm:$0xff] %vm278_vm0, %v241_v9  ;;  %v129_v59 = vmul.f32 %v375_v1, %v61_v48  ;;  %v254_v61 = vmax.f32 %v190_v46, 0.0  ;;  %v194_v62 = vadd.f32 %v380_v2, %v126_v47  ;;  %v130_v63 = vmul.f32 %v375_v1, %v62_v52 }
  0x25   :  { %307 = vst.msk [vmem:[%s961_s3 + $0xe0] sm:$0xff] %vm278_vm0, %v242_v13  ;;  %v255_v4 = vmax.f32 %v191_v50, 0.0  ;;  %v195_v5 = vadd.f32 %v380_v2, %v127_v51  ;;  %v131_v6 = vmul.f32 %v375_v1, %v63_v56  ;;  %v256_v8 = vmax.f32 %v192_v54, 0.0 }
  0x26   :  { %308 = vst.msk [vmem:[%s961_s3 + $0xe8] sm:$0xff] %vm278_vm0, %v243_v17  ;;  %v196_v9 = vadd.f32 %v380_v2, %v128_v55  ;;  %v132_v10 = vmul.f32 %v375_v1, %v64_v60  ;;  %v257_v12 = vmax.f32 %v193_v58, 0.0  ;;  %v197_v13 = vadd.f32 %v380_v2, %v129_v59 }
  0x27   :  { %309 = vst.msk [vmem:[%s961_s3 + $0xf0] sm:$0xff] %vm278_vm0, %v244_v21  ;;  %v133_v14 = vmul.f32 %v375_v1, %v65_v0  ;;  %v145_v16 = vmul.f32 %v375_v1, %v77_v3  ;;  %v258_v17 = vmax.f32 %v194_v62, 0.0  ;;  %v198_v18 = vadd.f32 %v380_v2, %v130_v63 }
  0x28   :  { %310 = vst.msk [vmem:[%s961_s3 + $0xf8] sm:$0xff] %vm278_vm0, %v245_v25  ;;  %v134_v19 = vmul.f32 %v375_v1, %v66_v7  ;;  %v259_v21 = vmax.f32 %v195_v5, 0.0  ;;  %v199_v22 = vadd.f32 %v380_v2, %v131_v6  ;;  %v135_v23 = vmul.f32 %v375_v1, %v67_v11 }
  0x29   :  { %311 = vst.msk [vmem:[%s961_s3 + $0x100] sm:$0xff] %vm278_vm0, %v246_v29  ;;  %v827_v25 = vadd.f32 %v380_v2, %v145_v16  ;;  %v260_v26 = vmax.f32 %v196_v9, 0.0  ;;  %v200_v27 = vadd.f32 %v380_v2, %v132_v10  ;;  %v136_v28 = vmul.f32 %v375_v1, %v68_v15  ;;  %v71_v29 = vld [vmem:[%s958_s0 + $0x1c8] sm:$0xff] }
  0x2a   :  { %312 = vst.msk [vmem:[%s961_s3 + $0x108] sm:$0xff] %vm278_vm0, %v247_v33  ;;  %v261_v30 = vmax.f32 %v197_v13, 0.0  ;;  %v201_v31 = vadd.f32 %v380_v2, %v133_v14  ;;  %v137_v32 = vmul.f32 %v375_v1, %v69_v20  ;;  %v72_v33 = vld [vmem:[%s958_s0 + $0x1d0] sm:$0xff]  ;;  %v262_v34 = vmax.f32 %v198_v18, 0.0 }
  0x2b   :  { %313 = vst.msk [vmem:[%s961_s3 + $0x110] sm:$0xff] %vm278_vm0, %v248_v37  ;;  %v202_v35 = vadd.f32 %v380_v2, %v134_v19  ;;  %v138_v36 = vmul.f32 %v375_v1, %v70_v24  ;;  %v73_v37 = vld [vmem:[%s958_s0 + $0x1d8] sm:$0xff]  ;;  %v263_v38 = vmax.f32 %v199_v22, 0.0  ;;  %v203_v39 = vadd.f32 %v380_v2, %v135_v23 }
  0x2c   :  { %314 = vst.msk [vmem:[%s961_s3 + $0x118] sm:$0xff] %vm278_vm0, %v249_v41  ;;  %v139_v40 = vmul.f32 %v375_v1, %v71_v29  ;;  %v74_v41 = vld [vmem:[%s958_s0 + $0x1e0] sm:$0xff]  ;;  %v264_v42 = vmax.f32 %v200_v27, 0.0  ;;  %v204_v43 = vadd.f32 %v380_v2, %v136_v28  ;;  %v140_v44 = vmul.f32 %v375_v1, %v72_v33 }
  0x2d   :  { %315 = vst.msk [vmem:[%s961_s3 + $0x120] sm:$0xff] %vm278_vm0, %v250_v45  ;;  %v75_v45 = vld [vmem:[%s958_s0 + $0x1e8] sm:$0xff]  ;;  %v265_v46 = vmax.f32 %v201_v31, 0.0  ;;  %v205_v47 = vadd.f32 %v380_v2, %v137_v32  ;;  %v141_v48 = vmul.f32 %v375_v1, %v73_v37  ;;  %v266_v50 = vmax.f32 %v202_v35, 0.0 }
  0x2e   :  { %316 = vst.msk [vmem:[%s961_s3 + $0x128] sm:$0xff] %vm278_vm0, %v251_v49  ;;  %v76_v49 = vld [vmem:[%s958_s0 + $0x1f0] sm:$0xff]  ;;  %v206_v51 = vadd.f32 %v380_v2, %v138_v36  ;;  %v142_v52 = vmul.f32 %v375_v1, %v74_v41  ;;  %v207_v54 = vadd.f32 %v380_v2, %v139_v40  ;;  %v143_v55 = vmul.f32 %v375_v1, %v75_v45 }
  0x2f   :  { %317 = vst.msk [vmem:[%s961_s3 + $0x130] sm:$0xff] %vm278_vm0, %v252_v53  ;;  %v267_v53 = vmax.f32 %v203_v39, 0.0  ;;  %v268_v56 = vmax.f32 %v204_v43, 0.0  ;;  %v144_v58 = vmul.f32 %v375_v1, %v76_v49  ;;  %v269_v59 = vmax.f32 %v205_v47, 0.0 }
  0x30   :  { %318 = vst.msk [vmem:[%s961_s3 + $0x138] sm:$0xff] %vm278_vm0, %v253_v57  ;;  %v208_v57 = vadd.f32 %v380_v2, %v140_v44  ;;  %v209_v60 = vadd.f32 %v380_v2, %v141_v48  ;;  %v210_v62 = vadd.f32 %v380_v2, %v142_v52  ;;  %v271_v1 = vmax.f32 %v207_v54, 0.0 }
  0x31   :  { %319 = vst.msk [vmem:[%s961_s3 + $0x140] sm:$0xff] %vm278_vm0, %v254_v61  ;;  %v270_v61 = vmax.f32 %v206_v51, 0.0  ;;  %v211_v63 = vadd.f32 %v380_v2, %v143_v55  ;;  %v212_v3 = vadd.f32 %v380_v2, %v144_v58  ;;  %v277_v7 = vmax.f32 %v827_v25, 0.0 }
  0x32   :  { %320 = vst.msk [vmem:[%s961_s3 + $0x148] sm:$0xff] %vm278_vm0, %v255_v4  ;;  %v272_v0 = vmax.f32 %v208_v57, 0.0  ;;  %v273_v4 = vmax.f32 %v209_v60, 0.0  ;;  %v274_v5 = vmax.f32 %v210_v62, 0.0 }
  0x33   :  { %321 = vst.msk [vmem:[%s961_s3 + $0x150] sm:$0xff] %vm278_vm0, %v256_v8  ;;  %v275_v6 = vmax.f32 %v211_v63, 0.0  ;;  %v276_v2 = vmax.f32 %v212_v3, 0.0 }
  0x34   :  { %322 = vst.msk [vmem:[%s961_s3 + $0x158] sm:$0xff] %vm278_vm0, %v257_v12 }
  0x35   :  { %323 = vst.msk [vmem:[%s961_s3 + $0x160] sm:$0xff] %vm278_vm0, %v258_v17 }
  0x36   :  { %324 = vst.msk [vmem:[%s961_s3 + $0x168] sm:$0xff] %vm278_vm0, %v259_v21 }
  0x37   :  { %325 = vst.msk [vmem:[%s961_s3 + $0x170] sm:$0xff] %vm278_vm0, %v260_v26 }
  0x38   :  { %326 = vst.msk [vmem:[%s961_s3 + $0x178] sm:$0xff] %vm278_vm0, %v261_v30 }
  0x39   :  { %327 = vst.msk [vmem:[%s961_s3 + $0x180] sm:$0xff] %vm278_vm0, %v262_v34 }
  0x3a   :  { %328 = vst.msk [vmem:[%s961_s3 + $0x188] sm:$0xff] %vm278_vm0, %v263_v38 }
  0x3b   :  { %329 = vst.msk [vmem:[%s961_s3 + $0x190] sm:$0xff] %vm278_vm0, %v264_v42 }
  0x3c   :  { %330 = vst.msk [vmem:[%s961_s3 + $0x198] sm:$0xff] %vm278_vm0, %v265_v46 }
  0x3d   :  { %331 = vst.msk [vmem:[%s961_s3 + $0x1a0] sm:$0xff] %vm278_vm0, %v266_v50 }
  0x3e   :  { %332 = vst.msk [vmem:[%s961_s3 + $0x1a8] sm:$0xff] %vm278_vm0, %v267_v53 }
  0x3f   :  { %333 = vst.msk [vmem:[%s961_s3 + $0x1b0] sm:$0xff] %vm278_vm0, %v268_v56 }
  0x40   :  { %334 = vst.msk [vmem:[%s961_s3 + $0x1b8] sm:$0xff] %vm278_vm0, %v269_v59 }
  0x41   :  { %335 = vst.msk [vmem:[%s961_s3 + $0x1c0] sm:$0xff] %vm278_vm0, %v270_v61 }
  0x42   :  { %336 = vst.msk [vmem:[%s961_s3 + $0x1c8] sm:$0xff] %vm278_vm0, %v271_v1 }
  0x43   :  { %337 = vst.msk [vmem:[%s961_s3 + $0x1d0] sm:$0xff] %vm278_vm0, %v272_v0 }
  0x44   :  { %338 = vst.msk [vmem:[%s961_s3 + $0x1d8] sm:$0xff] %vm278_vm0, %v273_v4 }
  0x45   :  { %339 = vst.msk [vmem:[%s961_s3 + $0x1e0] sm:$0xff] %vm278_vm0, %v274_v5 }
  0x46   :  { %340 = vst.msk [vmem:[%s961_s3 + $0x1e8] sm:$0xff] %vm278_vm0, %v275_v6 }
  0x47   :  { %341 = vst.msk [vmem:[%s961_s3 + $0x1f0] sm:$0xff] %vm278_vm0, %v276_v2 }
  0x48   :  { %342 = vst.msk [vmem:[%s961_s3 + $0x1f8] sm:$0xff] %vm278_vm0, %v277_v7 }

// kernel: relu_bn_convtranspose2d.11
= control target key start
LH: loop header
LB: loop body
LE: loop exit
PB: predicated region body
PF: predicated region fallthrough
CT: control target
= control target key end

     0   :  { %vm336_vm0 = vcmask 1041408   ;;  %vm239_vm1 = vcmask 31744   ;;  %s1629_s1 = inlined_call_operand.vmem [shape: bf16[4,128], index: 1, kind: input, shape index: {}]   ;;  %s1630_s0 = inlined_call_operand.vmem [shape: bf16[512,4], index: 0, kind: input, shape index: {}]   ;;  %s1631_s2 = inlined_call_operand.vmem [shape: f32[512,128], index: 2, kind: output, shape index: {0}]   ;;  %s1632_s3 = inlined_call_operand.vmem [shape: f32[8,128], index: 3, kind: output, shape index: {1}]  }
   0x1   :  { %v78_v0 = vld [vmem:[%s1629_s1] sm:$0x3]  ;;  %v947_v4 = vld [vmem:[%s1630_s0 + $0x8] sm:$0xff]  ;;  %v948_v7 = vld [vmem:[%s1630_s0 + $0x10] sm:$0xff] }
   0x2   :  { %v338_v1 = vsel %vm336_vm0, %v78_v0, 0  ;;  %v946_v2 = vld [vmem:[%s1630_s0] sm:$0xff]  ;;  %v955_v5 = vld [vmem:[%s1630_s0 + $0x48] sm:$0xff]  ;;  %v956_v8 = vld [vmem:[%s1630_s0 + $0x50] sm:$0xff] }
   0x3   :  { %v954_v3 = vld [vmem:[%s1630_s0 + $0x40] sm:$0xff]  ;;  %347 = vmatpush.bf16.msra.mxu0 %v338_v1  ;;  %978 = vmatpush.bf16.msra.mxu1 %v338_v1  ;;  %v963_v9 = vld [vmem:[%s1630_s0 + $0x88] sm:$0xff]  ;;  %v949_v10 = vld [vmem:[%s1630_s0 + $0x18] sm:$0xff] }
   0x4   :  { %979 = vmatpush.bf16.msra.mxu2 %v338_v1  ;;  %980 = vmatpush.bf16.msra.mxu3 %v338_v1  ;;  %v962_v6 = vld [vmem:[%s1630_s0 + $0x80] sm:$0xff]  ;;  %v957_v11 = vld [vmem:[%s1630_s0 + $0x58] sm:$0xff]  ;;  %v964_v12 = vld [vmem:[%s1630_s0 + $0x90] sm:$0xff] }
   0x5   :  { %v970_v13 = vld [vmem:[%s1630_s0 + $0xc0] sm:$0xff]  ;;  %v965_v16 = vld [vmem:[%s1630_s0 + $0x98] sm:$0xff]  ;;  %v971_v17 = vld [vmem:[%s1630_s0 + $0xc8] sm:$0xff] }
   0x6   :  { %914 = vmatmul.msk.bf16.vlgmr.msra.gmra.mxu0 %vm239_vm1, %v946_v2  ;;  %922 = vmatmul.msk.bf16.vlgmr.msra.gmra.mxu1 %vm239_vm1, %v954_v3  ;;  %v950_v14 = vld [vmem:[%s1630_s0 + $0x20] sm:$0xff]  ;;  %v951_v18 = vld [vmem:[%s1630_s0 + $0x28] sm:$0xff]  ;;  %v972_v21 = vld [vmem:[%s1630_s0 + $0xd0] sm:$0xff] }
   0x7   :  { %930 = vmatmul.msk.bf16.vlgmr.msra.gmra.mxu2 %vm239_vm1, %v962_v6  ;;  %938 = vmatmul.msk.bf16.vlgmr.msra.gmra.mxu3 %vm239_vm1, %v970_v13  ;;  %v958_v15 = vld [vmem:[%s1630_s0 + $0x60] sm:$0xff]  ;;  %v959_v19 = vld [vmem:[%s1630_s0 + $0x68] sm:$0xff]  ;;  %v952_v22 = vld [vmem:[%s1630_s0 + $0x30] sm:$0xff] }
   0x8   :  { %v966_v20 = vld [vmem:[%s1630_s0 + $0xa0] sm:$0xff]  ;;  %v960_v23 = vld [vmem:[%s1630_s0 + $0x70] sm:$0xff]  ;;  %v967_v24 = vld [vmem:[%s1630_s0 + $0xa8] sm:$0xff] }
   0x9   :  { %v973_v25 = vld [vmem:[%s1630_s0 + $0xd8] sm:$0xff]  ;;  %v968_v28 = vld [vmem:[%s1630_s0 + $0xb0] sm:$0xff]  ;;  %v974_v29 = vld [vmem:[%s1630_s0 + $0xe0] sm:$0xff] }
   0xa   :  { %v953_v26 = vld [vmem:[%s1630_s0 + $0x38] sm:$0xff]  ;;  %v975_v33 = vld [vmem:[%s1630_s0 + $0xe8] sm:$0xff]  ;;  %v976_v45 = vld [vmem:[%s1630_s0 + $0xf0] sm:$0xff] }
   0xb   :  { %v961_v27 = vld [vmem:[%s1630_s0 + $0x78] sm:$0xff] }
   0xc   :  { %v969_v32 = vld [vmem:[%s1630_s0 + $0xb8] sm:$0xff] }
   0xd   :  { %v977_v58 = vld [vmem:[%s1630_s0 + $0xf8] sm:$0xff] }
  0x16   :  { %915 = vmatmul.msk.bf16.gmra.mxu0 %vm239_vm1, %v947_v4  ;;  %923 = vmatmul.msk.bf16.gmra.mxu1 %vm239_vm1, %v955_v5 }
  0x17   :  { %931 = vmatmul.msk.bf16.gmra.mxu2 %vm239_vm1, %v963_v9  ;;  %939 = vmatmul.msk.bf16.gmra.mxu3 %vm239_vm1, %v971_v17 }
  0x26   :  { %916 = vmatmul.msk.bf16.gmra.mxu0 %vm239_vm1, %v948_v7  ;;  %924 = vmatmul.msk.bf16.gmra.mxu1 %vm239_vm1, %v956_v8 }
  0x27   :  { %932 = vmatmul.msk.bf16.gmra.mxu2 %vm239_vm1, %v964_v12  ;;  %940 = vmatmul.msk.bf16.gmra.mxu3 %vm239_vm1, %v972_v21 }
  0x36   :  { %917 = vmatmul.msk.bf16.gmra.mxu0 %vm239_vm1, %v949_v10  ;;  %925 = vmatmul.msk.bf16.gmra.mxu1 %vm239_vm1, %v957_v11 }
  0x37   :  { %933 = vmatmul.msk.bf16.gmra.mxu2 %vm239_vm1, %v965_v16  ;;  %941 = vmatmul.msk.bf16.gmra.mxu3 %vm239_vm1, %v973_v25 }
  0x46   :  { %918 = vmatmul.msk.bf16.gmra.mxu0 %vm239_vm1, %v950_v14  ;;  %926 = vmatmul.msk.bf16.gmra.mxu1 %vm239_vm1, %v958_v15 }
  0x47   :  { %934 = vmatmul.msk.bf16.gmra.mxu2 %vm239_vm1, %v966_v20  ;;  %942 = vmatmul.msk.bf16.gmra.mxu3 %vm239_vm1, %v974_v29 }
  0x56   :  { %919 = vmatmul.msk.bf16.gmra.mxu0 %vm239_vm1, %v951_v18  ;;  %927 = vmatmul.msk.bf16.gmra.mxu1 %vm239_vm1, %v959_v19 }
  0x57   :  { %935 = vmatmul.msk.bf16.gmra.mxu2 %vm239_vm1, %v967_v24  ;;  %943 = vmatmul.msk.bf16.gmra.mxu3 %vm239_vm1, %v975_v33 }
  0x66   :  { %920 = vmatmul.msk.bf16.gmra.mxu0 %vm239_vm1, %v952_v22  ;;  %928 = vmatmul.msk.bf16.gmra.mxu1 %vm239_vm1, %v960_v23 }
  0x67   :  { %936 = vmatmul.msk.bf16.gmra.mxu2 %vm239_vm1, %v968_v28  ;;  %944 = vmatmul.msk.bf16.gmra.mxu3 %vm239_vm1, %v976_v45 }
  0x76   :  { %921 = vmatmul.msk.bf16.gmra.mxu0 %vm239_vm1, %v953_v26  ;;  %929 = vmatmul.msk.bf16.gmra.mxu1 %vm239_vm1, %v961_v27 }
  0x77   :  { %937 = vmatmul.msk.bf16.gmra.mxu2 %vm239_vm1, %v969_v32  ;;  %945 = vmatmul.msk.bf16.gmra.mxu3 %vm239_vm1, %v977_v58 }
  0x83   :  { %v349_v30 = vpop.f32.mrf.mxu0  ;;  %v1118_v31 = vpop.f32.mrf.mxu1 }
  0x84   :  { %509 = vst [vmem:[%s1631_s2] sm:$0xff] %v349_v30  ;;  %v644_v36 = vmul.f32 %v349_v30, %v349_v30 }
  0x85   :  { %525 = vst [vmem:[%s1631_s2 + $0x80] sm:$0xff] %v1118_v31 }
  0x8a   :  { %v1162_v50 = vpop.f32.mrf.mxu2  ;;  %v1232_v4 = vpop.f32.mrf.mxu3 }
  0x8b   :  { %v351_v34 = vpop.f32.mrf.mxu0  ;;  %v1135_v35 = vpop.f32.mrf.mxu1  ;;  %541 = vst [vmem:[%s1631_s2 + $0x100] sm:$0xff] %v1162_v50 }
  0x8c   :  { %510 = vst [vmem:[%s1631_s2 + $0x8] sm:$0xff] %v351_v34  ;;  %v574_v37 = vadd.f32 %v351_v34, %v349_v30  ;;  %v645_v38 = vmul.f32 %v351_v34, %v351_v34 }
  0x8d   :  { %526 = vst [vmem:[%s1631_s2 + $0x88] sm:$0xff] %v1135_v35 }
  0x8e   :  { %v708_v39 = vadd.f32 %v645_v38, %v644_v36  ;;  %557 = vst [vmem:[%s1631_s2 + $0x180] sm:$0xff] %v1232_v4 }
  0x92   :  { %v1179_v56 = vpop.f32.mrf.mxu2  ;;  %v1253_v8 = vpop.f32.mrf.mxu3 }
  0x93   :  { %v354_v40 = vpop.f32.mrf.mxu0  ;;  %v1144_v41 = vpop.f32.mrf.mxu1  ;;  %542 = vst [vmem:[%s1631_s2 + $0x108] sm:$0xff] %v1179_v56 }
  0x94   :  { %511 = vst [vmem:[%s1631_s2 + $0x10] sm:$0xff] %v354_v40  ;;  %v575_v42 = vadd.f32 %v574_v37, %v354_v40  ;;  %v646_v43 = vmul.f32 %v354_v40, %v354_v40 }
  0x95   :  { %527 = vst [vmem:[%s1631_s2 + $0x90] sm:$0xff] %v1144_v41 }
  0x96   :  { %v709_v44 = vadd.f32 %v708_v39, %v646_v43  ;;  %558 = vst [vmem:[%s1631_s2 + $0x188] sm:$0xff] %v1253_v8 }
  0x9a   :  { %v1200_v61 = vpop.f32.mrf.mxu2  ;;  %v1274_v12 = vpop.f32.mrf.mxu3 }
  0x9b   :  { %v356_v46 = vpop.f32.mrf.mxu0  ;;  %v1157_v47 = vpop.f32.mrf.mxu1  ;;  %543 = vst [vmem:[%s1631_s2 + $0x110] sm:$0xff] %v1200_v61 }
  0x9c   :  { %512 = vst [vmem:[%s1631_s2 + $0x18] sm:$0xff] %v356_v46  ;;  %v576_v48 = vadd.f32 %v575_v42, %v356_v46  ;;  %v647_v49 = vmul.f32 %v356_v46, %v356_v46 }
  0x9d   :  { %528 = vst [vmem:[%s1631_s2 + $0x98] sm:$0xff] %v1157_v47 }
  0x9e   :  { %v710_v51 = vadd.f32 %v709_v44, %v647_v49  ;;  %559 = vst [vmem:[%s1631_s2 + $0x190] sm:$0xff] %v1274_v12 }
  0xa2   :  { %v1215_v0 = vpop.f32.mrf.mxu2  ;;  %v1295_v16 = vpop.f32.mrf.mxu3 }
  0xa3   :  { %v359_v52 = vpop.f32.mrf.mxu0  ;;  %v1172_v53 = vpop.f32.mrf.mxu1  ;;  %544 = vst [vmem:[%s1631_s2 + $0x118] sm:$0xff] %v1215_v0 }
  0xa4   :  { %513 = vst [vmem:[%s1631_s2 + $0x20] sm:$0xff] %v359_v52  ;;  %v1177_v54 = vadd.f32 %v576_v48, %v359_v52  ;;  %v648_v55 = vmul.f32 %v359_v52, %v359_v52 }
  0xa5   :  { %529 = vst [vmem:[%s1631_s2 + $0xa0] sm:$0xff] %v1172_v53 }
  0xa6   :  { %v1185_v57 = vadd.f32 %v710_v51, %v648_v55  ;;  %560 = vst [vmem:[%s1631_s2 + $0x198] sm:$0xff] %v1295_v16 }
  0xaa   :  { %v1230_v3 = vpop.f32.mrf.mxu2  ;;  %v1316_v20 = vpop.f32.mrf.mxu3 }
  0xab   :  { %v361_v59 = vpop.f32.mrf.mxu0  ;;  %v1195_v60 = vpop.f32.mrf.mxu1  ;;  %545 = vst [vmem:[%s1631_s2 + $0x120] sm:$0xff] %v1230_v3 }
  0xac   :  { %514 = vst [vmem:[%s1631_s2 + $0x28] sm:$0xff] %v361_v59  ;;  %v649_v25 = vmul.f32 %v361_v59, %v361_v59  ;;  %v578_v26 = vadd.f32 %v1177_v54, %v361_v59 }
  0xad   :  { %530 = vst [vmem:[%s1631_s2 + $0xa8] sm:$0xff] %v1195_v60 }
  0xae   :  { %561 = vst [vmem:[%s1631_s2 + $0x1a0] sm:$0xff] %v1316_v20  ;;  %v712_v28 = vadd.f32 %v1185_v57, %v649_v25 }
  0xb2   :  { %v1251_v7 = vpop.f32.mrf.mxu2  ;;  %v1337_v24 = vpop.f32.mrf.mxu3 }
  0xb3   :  { %v364_v62 = vpop.f32.mrf.mxu0  ;;  %v1210_v63 = vpop.f32.mrf.mxu1  ;;  %546 = vst [vmem:[%s1631_s2 + $0x128] sm:$0xff] %v1251_v7 }
  0xb4   :  { %515 = vst [vmem:[%s1631_s2 + $0x30] sm:$0xff] %v364_v62  ;;  %v650_v27 = vmul.f32 %v364_v62, %v364_v62  ;;  %v579_v29 = vadd.f32 %v578_v26, %v364_v62 }
  0xb5   :  { %531 = vst [vmem:[%s1631_s2 + $0xb0] sm:$0xff] %v1210_v63 }
  0xb6   :  { %562 = vst [vmem:[%s1631_s2 + $0x1a8] sm:$0xff] %v1337_v24  ;;  %v713_v34 = vadd.f32 %v712_v28, %v650_v27 }
  0xba   :  { %v1272_v11 = vpop.f32.mrf.mxu2  ;;  %v1360_v39 = vpop.f32.mrf.mxu3 }
  0xbb   :  { %v366_v1 = vpop.f32.mrf.mxu0  ;;  %v1225_v2 = vpop.f32.mrf.mxu1  ;;  %547 = vst [vmem:[%s1631_s2 + $0x130] sm:$0xff] %v1272_v11 }
  0xbc   :  { %516 = vst [vmem:[%s1631_s2 + $0x38] sm:$0xff] %v366_v1  ;;  %v651_v30 = vmul.f32 %v366_v1, %v366_v1  ;;  %v580_v36 = vadd.f32 %v579_v29, %v366_v1 }
  0xbd   :  { %532 = vst [vmem:[%s1631_s2 + $0xb8] sm:$0xff] %v1225_v2 }
  0xbe   :  { %v714_v40 = vadd.f32 %v713_v34, %v651_v30  ;;  %563 = vst [vmem:[%s1631_s2 + $0x1b0] sm:$0xff] %v1360_v39 }
  0xc2   :  { %v1293_v15 = vpop.f32.mrf.mxu2  ;;  %v1381_v62 = vpop.f32.mrf.mxu3 }
  0xc3   :  { %v369_v5 = vpop.f32.mrf.mxu0  ;;  %v1246_v6 = vpop.f32.mrf.mxu1  ;;  %548 = vst [vmem:[%s1631_s2 + $0x138] sm:$0xff] %v1293_v15 }
  0xc4   :  { %517 = vst [vmem:[%s1631_s2 + $0x40] sm:$0xff] %v369_v5  ;;  %v652_v37 = vmul.f32 %v369_v5, %v369_v5  ;;  %v581_v42 = vadd.f32 %v580_v36, %v369_v5 }
  0xc5   :  { %533 = vst [vmem:[%s1631_s2 + $0xc0] sm:$0xff] %v1246_v6 }
  0xc6   :  { %v715_v44 = vadd.f32 %v714_v40, %v652_v37  ;;  %564 = vst [vmem:[%s1631_s2 + $0x1b8] sm:$0xff] %v1381_v62 }
  0xca   :  { %v1314_v19 = vpop.f32.mrf.mxu2  ;;  %v1402_v37 = vpop.f32.mrf.mxu3 }
  0xcb   :  { %v371_v9 = vpop.f32.mrf.mxu0  ;;  %v1267_v10 = vpop.f32.mrf.mxu1  ;;  %549 = vst [vmem:[%s1631_s2 + $0x140] sm:$0xff] %v1314_v19 }
  0xcc   :  { %518 = vst [vmem:[%s1631_s2 + $0x48] sm:$0xff] %v371_v9  ;;  %v653_v43 = vmul.f32 %v371_v9, %v371_v9  ;;  %v582_v45 = vadd.f32 %v581_v42, %v371_v9 }
  0xcd   :  { %534 = vst [vmem:[%s1631_s2 + $0xc8] sm:$0xff] %v1267_v10 }
  0xce   :  { %v716_v48 = vadd.f32 %v715_v44, %v653_v43  ;;  %565 = vst [vmem:[%s1631_s2 + $0x1c0] sm:$0xff] %v1402_v37  ;;  %v661_v43 = vmul.f32 %v1135_v35, %v1135_v35 }
  0xd2   :  { %v1335_v23 = vpop.f32.mrf.mxu2 }
  0xd3   :  { %v374_v13 = vpop.f32.mrf.mxu0  ;;  %v1288_v14 = vpop.f32.mrf.mxu1  ;;  %550 = vst [vmem:[%s1631_s2 + $0x148] sm:$0xff] %v1335_v23 }
  0xd4   :  { %519 = vst [vmem:[%s1631_s2 + $0x50] sm:$0xff] %v374_v13  ;;  %v654_v46 = vmul.f32 %v374_v13, %v374_v13  ;;  %v583_v49 = vadd.f32 %v582_v45, %v374_v13 }
  0xd5   :  { %535 = vst [vmem:[%s1631_s2 + $0xd0] sm:$0xff] %v1288_v14 }
  0xd6   :  { %v717_v55 = vadd.f32 %v716_v48, %v654_v46 }
  0xda   :  { %v1358_v38 = vpop.f32.mrf.mxu2 }
  0xdb   :  { %v376_v17 = vpop.f32.mrf.mxu0  ;;  %v1309_v18 = vpop.f32.mrf.mxu1  ;;  %551 = vst [vmem:[%s1631_s2 + $0x150] sm:$0xff] %v1358_v38 }
  0xdc   :  { %520 = vst [vmem:[%s1631_s2 + $0x58] sm:$0xff] %v376_v17  ;;  %v655_v51 = vmul.f32 %v376_v17, %v376_v17  ;;  %v584_v57 = vadd.f32 %v583_v49, %v376_v17  ;;  %v663_v49 = vmul.f32 %v1157_v47, %v1157_v47 }
  0xdd   :  { %536 = vst [vmem:[%s1631_s2 + $0xd8] sm:$0xff] %v1309_v18 }
  0xde   :  { %v718_v1 = vadd.f32 %v717_v55, %v655_v51 }
  0xe2   :  { %v1379_v59 = vpop.f32.mrf.mxu2 }
  0xe3   :  { %v379_v21 = vpop.f32.mrf.mxu0  ;;  %v1330_v22 = vpop.f32.mrf.mxu1  ;;  %552 = vst [vmem:[%s1631_s2 + $0x158] sm:$0xff] %v1379_v59 }
  0xe4   :  { %521 = vst [vmem:[%s1631_s2 + $0x60] sm:$0xff] %v379_v21  ;;  %v656_v58 = vmul.f32 %v379_v21, %v379_v21  ;;  %v585_v5 = vadd.f32 %v584_v57, %v379_v21  ;;  %v1430_v57 = vpop.f32.mrf.mxu3 }
  0xe5   :  { %537 = vst [vmem:[%s1631_s2 + $0xe0] sm:$0xff] %v1330_v22 }
  0xe6   :  { %v719_v13 = vadd.f32 %v718_v1, %v656_v58  ;;  %566 = vst [vmem:[%s1631_s2 + $0x1c8] sm:$0xff] %v1430_v57 }
  0xea   :  { %v1400_v36 = vpop.f32.mrf.mxu2 }
  0xeb   :  { %v381_v32 = vpop.f32.mrf.mxu0  ;;  %v1353_v33 = vpop.f32.mrf.mxu1  ;;  %553 = vst [vmem:[%s1631_s2 + $0x160] sm:$0xff] %v1400_v36 }
  0xec   :  { %522 = vst [vmem:[%s1631_s2 + $0x68] sm:$0xff] %v381_v32  ;;  %v657_v9 = vmul.f32 %v381_v32, %v381_v32  ;;  %v586_v17 = vadd.f32 %v585_v5, %v381_v32  ;;  %v660_v32 = vmul.f32 %v1118_v31, %v1118_v31 }
  0xed   :  { %538 = vst [vmem:[%s1631_s2 + $0xe8] sm:$0xff] %v1353_v33 }
  0xee   :  { %v720_v26 = vadd.f32 %v719_v13, %v657_v9  ;;  %v666_v9 = vmul.f32 %v1210_v63, %v1210_v63 }
  0xf2   :  { %v1428_v55 = vpop.f32.mrf.mxu2 }
  0xf3   :  { %v384_v52 = vpop.f32.mrf.mxu0  ;;  %v1374_v54 = vpop.f32.mrf.mxu1  ;;  %554 = vst [vmem:[%s1631_s2 + $0x168] sm:$0xff] %v1428_v55 }
  0xf4   :  { %523 = vst [vmem:[%s1631_s2 + $0x70] sm:$0xff] %v384_v52  ;;  %v658_v25 = vmul.f32 %v384_v52, %v384_v52  ;;  %v587_v27 = vadd.f32 %v586_v17, %v384_v52 }
  0xf5   :  { %539 = vst [vmem:[%s1631_s2 + $0xf0] sm:$0xff] %v1374_v54 }
  0xf6   :  { %v721_v21 = vadd.f32 %v720_v26, %v658_v25 }
  0xfb   :  { %v386_v28 = vpop.f32.mrf.mxu0  ;;  %v1395_v29 = vpop.f32.mrf.mxu1 }
  0xfc   :  { %524 = vst [vmem:[%s1631_s2 + $0x78] sm:$0xff] %v386_v28  ;;  %v588_v30 = vadd.f32 %v587_v27, %v386_v28  ;;  %v659_v34 = vmul.f32 %v386_v28, %v386_v28  ;;  %v1452_v27 = vpop.f32.mrf.mxu2  ;;  %v1454_v28 = vpop.f32.mrf.mxu3 }
  0xfd   :  { %540 = vst [vmem:[%s1631_s2 + $0xf8] sm:$0xff] %v1395_v29 }
  0xfe   :  { %v589_v40 = vadd.f32 %v588_v30, %v1118_v31  ;;  %v722_v42 = vadd.f32 %v721_v21, %v659_v34  ;;  %v662_v31 = vmul.f32 %v1144_v41, %v1144_v41  ;;  %555 = vst [vmem:[%s1631_s2 + $0x170] sm:$0xff] %v1452_v27 }
  0xff   :  { %567 = vst [vmem:[%s1631_s2 + $0x1d0] sm:$0xff] %v1454_v28 }
 0x100   :  { %v590_v44 = vadd.f32 %v589_v40, %v1135_v35  ;;  %v723_v45 = vadd.f32 %v722_v42, %v660_v32  ;;  %v664_v35 = vmul.f32 %v1172_v53, %v1172_v53  ;;  %v670_v32 = vmul.f32 %v1288_v14, %v1288_v14 }
 0x102   :  { %v591_v46 = vadd.f32 %v590_v44, %v1144_v41  ;;  %v724_v48 = vadd.f32 %v723_v45, %v661_v43 }
 0x104   :  { %v592_v51 = vadd.f32 %v591_v46, %v1157_v47  ;;  %v725_v52 = vadd.f32 %v724_v48, %v662_v31  ;;  %v665_v47 = vmul.f32 %v1195_v60, %v1195_v60  ;;  %v1476_v45 = vpop.f32.mrf.mxu2  ;;  %v1478_v31 = vpop.f32.mrf.mxu3 }
 0x105   :  { %556 = vst [vmem:[%s1631_s2 + $0x178] sm:$0xff] %v1476_v45 }
 0x106   :  { %v593_v41 = vadd.f32 %v592_v51, %v1172_v53  ;;  %v726_v58 = vadd.f32 %v725_v52, %v663_v49  ;;  %v667_v53 = vmul.f32 %v1225_v2, %v1225_v2  ;;  %568 = vst [vmem:[%s1631_s2 + $0x1d8] sm:$0xff] %v1478_v31  ;;  %v673_v49 = vmul.f32 %v1353_v33, %v1353_v33 }
 0x108   :  { %v594_v1 = vadd.f32 %v593_v41, %v1195_v60  ;;  %v727_v5 = vadd.f32 %v726_v58, %v664_v35  ;;  %v668_v60 = vmul.f32 %v1246_v6, %v1246_v6  ;;  %v674_v35 = vmul.f32 %v1374_v54, %v1374_v54 }
 0x109   :  { %v675_v58 = vmul.f32 %v1395_v29, %v1395_v29 }
 0x10a   :  { %v728_v13 = vadd.f32 %v727_v5, %v665_v47  ;;  %v595_v17 = vadd.f32 %v594_v1, %v1210_v63 }
 0x10c   :  { %v596_v25 = vadd.f32 %v595_v17, %v1225_v2  ;;  %v729_v26 = vadd.f32 %v728_v13, %v666_v9  ;;  %v669_v2 = vmul.f32 %v1267_v10, %v1267_v10  ;;  %v1500_v47 = vpop.f32.mrf.mxu3 }
 0x10d   :  { %569 = vst [vmem:[%s1631_s2 + $0x1e0] sm:$0xff] %v1500_v47 }
 0x10e   :  { %v597_v63 = vadd.f32 %v596_v25, %v1246_v6  ;;  %v730_v21 = vadd.f32 %v729_v26, %v667_v53  ;;  %v671_v6 = vmul.f32 %v1309_v18, %v1309_v18  ;;  %v679_v25 = vmul.f32 %v1215_v0, %v1215_v0 }
 0x110   :  { %v598_v30 = vadd.f32 %v597_v63, %v1267_v10  ;;  %v731_v34 = vadd.f32 %v730_v21, %v668_v60  ;;  %v681_v21 = vmul.f32 %v1251_v7, %v1251_v7 }
 0x112   :  { %v599_v40 = vadd.f32 %v598_v30, %v1288_v14  ;;  %v732_v42 = vadd.f32 %v731_v34, %v669_v2  ;;  %v672_v14 = vmul.f32 %v1330_v22, %v1330_v22  ;;  %v682_v30 = vmul.f32 %v1272_v11, %v1272_v11 }
 0x114   :  { %v600_v43 = vadd.f32 %v599_v40, %v1309_v18  ;;  %v733_v44 = vadd.f32 %v732_v42, %v670_v32  ;;  %v683_v40 = vmul.f32 %v1293_v15, %v1293_v15 }
 0x116   :  { %v601_v10 = vadd.f32 %v600_v43, %v1330_v22  ;;  %v734_v46 = vadd.f32 %v733_v44, %v671_v6 }
 0x118   :  { %v735_v18 = vadd.f32 %v734_v46, %v672_v14  ;;  %v602_v48 = vadd.f32 %v601_v10, %v1353_v33  ;;  %v676_v33 = vmul.f32 %v1162_v50, %v1162_v50  ;;  %v686_v14 = vmul.f32 %v1358_v38, %v1358_v38 }
 0x11a   :  { %v736_v51 = vadd.f32 %v735_v18, %v673_v49  ;;  %v603_v52 = vadd.f32 %v602_v48, %v1374_v54  ;;  %v677_v54 = vmul.f32 %v1179_v56, %v1179_v56  ;;  %v687_v49 = vmul.f32 %v1379_v59, %v1379_v59 }
 0x11c   :  { %v737_v41 = vadd.f32 %v736_v51, %v674_v35  ;;  %v604_v22 = vadd.f32 %v603_v52, %v1395_v29  ;;  %v678_v29 = vmul.f32 %v1200_v61, %v1200_v61 }
 0x11e   :  { %v605_v1 = vadd.f32 %v604_v22, %v1162_v50  ;;  %v738_v5 = vadd.f32 %v737_v41, %v675_v58  ;;  %v1518_v50 = vpop.f32.mrf.mxu3 }
 0x11f   :  { %570 = vst [vmem:[%s1631_s2 + $0x1e8] sm:$0xff] %v1518_v50 }
 0x120   :  { %v606_v9 = vadd.f32 %v605_v1, %v1179_v56  ;;  %v739_v13 = vadd.f32 %v738_v5, %v676_v33  ;;  %v680_v56 = vmul.f32 %v1230_v3, %v1230_v3  ;;  %v690_v33 = vmul.f32 %v1452_v27, %v1452_v27 }
 0x122   :  { %v607_v17 = vadd.f32 %v606_v9, %v1200_v61  ;;  %v740_v53 = vadd.f32 %v739_v13, %v677_v54  ;;  %v691_v54 = vmul.f32 %v1476_v45, %v1476_v45  ;;  %v982_v9 = vmov 0.0  }
 0x123   :  { %573 = vst [vmem:[%s1632_s3] sm:$0xff] %v982_v9 }
 0x124   :  { %v608_v26 = vadd.f32 %v607_v17, %v1215_v0  ;;  %v741_v60 = vadd.f32 %v740_v53, %v678_v29 }
 0x126   :  { %v609_v63 = vadd.f32 %v608_v26, %v1230_v3  ;;  %v742_v61 = vadd.f32 %v741_v60, %v679_v25  ;;  %v1536_v3 = vpop.f32.mrf.mxu3  ;;  %v695_v26 = vmul.f32 %v1295_v16, %v1295_v16 }
 0x127   :  { %571 = vst [vmem:[%s1631_s2 + $0x1f0] sm:$0xff] %v1536_v3 }
 0x128   :  { %v610_v2 = vadd.f32 %v609_v63, %v1251_v7  ;;  %v743_v0 = vadd.f32 %v742_v61, %v680_v56  ;;  %v684_v7 = vmul.f32 %v1314_v19, %v1314_v19 }
 0x12a   :  { %v744_v34 = vadd.f32 %v743_v0, %v681_v21  ;;  %v611_v32 = vadd.f32 %v610_v2, %v1272_v11  ;;  %v685_v11 = vmul.f32 %v1335_v23, %v1335_v23 }
 0x12c   :  { %v612_v42 = vadd.f32 %v611_v32, %v1293_v15  ;;  %v745_v6 = vadd.f32 %v744_v34, %v682_v30 }
 0x12e   :  { %v613_v43 = vadd.f32 %v612_v42, %v1314_v19  ;;  %v746_v44 = vadd.f32 %v745_v6, %v683_v40  ;;  %v1554_v19 = vpop.f32.mrf.mxu3 }
 0x12f   :  { %572 = vst [vmem:[%s1631_s2 + $0x1f8] sm:$0xff] %v1554_v19 }
 0x130   :  { %v614_v10 = vadd.f32 %v613_v43, %v1335_v23  ;;  %v747_v15 = vadd.f32 %v746_v44, %v684_v7 }
 0x132   :  { %v615_v46 = vadd.f32 %v614_v10, %v1358_v38  ;;  %v748_v18 = vadd.f32 %v747_v15, %v685_v11  ;;  %v688_v38 = vmul.f32 %v1400_v36, %v1400_v36  ;;  %v703_v11 = vmul.f32 %v1478_v31, %v1478_v31 }
 0x134   :  { %v616_v48 = vadd.f32 %v615_v46, %v1379_v59  ;;  %v749_v51 = vadd.f32 %v748_v18, %v686_v14  ;;  %v689_v59 = vmul.f32 %v1428_v55, %v1428_v55  ;;  %v704_v14 = vmul.f32 %v1500_v47, %v1500_v47 }
 0x135   :  { %v705_v18 = vmul.f32 %v1518_v50, %v1518_v50 }
 0x136   :  { %v750_v23 = vadd.f32 %v749_v51, %v687_v49  ;;  %v617_v52 = vadd.f32 %v616_v48, %v1400_v36  ;;  %v692_v36 = vmul.f32 %v1232_v4, %v1232_v4  ;;  %v706_v49 = vmul.f32 %v1536_v3, %v1536_v3 }
 0x138   :  { %v751_v35 = vadd.f32 %v750_v23, %v688_v38  ;;  %v618_v41 = vadd.f32 %v617_v52, %v1428_v55  ;;  %v707_v23 = vmul.f32 %v1554_v19, %v1554_v19 }
 0x13a   :  { %v752_v22 = vadd.f32 %v751_v35, %v689_v59  ;;  %v619_v58 = vadd.f32 %v618_v41, %v1452_v27  ;;  %v693_v27 = vmul.f32 %v1253_v8, %v1253_v8 }
 0x13c   :  { %v753_v1 = vadd.f32 %v752_v22, %v690_v33  ;;  %v620_v5 = vadd.f32 %v619_v58, %v1476_v45  ;;  %v694_v45 = vmul.f32 %v1274_v12, %v1274_v12 }
 0x13e   :  { %v621_v55 = vadd.f32 %v620_v5, %v1232_v4  ;;  %v754_v13 = vadd.f32 %v753_v1, %v691_v54  ;;  %v696_v4 = vmul.f32 %v1316_v20, %v1316_v20 }
 0x140   :  { %v622_v29 = vadd.f32 %v621_v55, %v1253_v8  ;;  %v755_v17 = vadd.f32 %v754_v13, %v692_v36  ;;  %v697_v8 = vmul.f32 %v1337_v24, %v1337_v24 }
 0x142   :  { %v623_v53 = vadd.f32 %v622_v29, %v1274_v12  ;;  %v756_v25 = vadd.f32 %v755_v17, %v693_v27  ;;  %v698_v12 = vmul.f32 %v1360_v39, %v1360_v39 }
 0x144   :  { %v624_v60 = vadd.f32 %v623_v53, %v1295_v16  ;;  %v757_v56 = vadd.f32 %v756_v25, %v694_v45  ;;  %v699_v16 = vmul.f32 %v1381_v62, %v1381_v62 }
 0x146   :  { %v625_v63 = vadd.f32 %v624_v60, %v1316_v20  ;;  %v758_v61 = vadd.f32 %v757_v56, %v695_v26  ;;  %v700_v20 = vmul.f32 %v1402_v37, %v1402_v37 }
 0x148   :  { %v626_v21 = vadd.f32 %v625_v63, %v1337_v24  ;;  %v759_v2 = vadd.f32 %v758_v61, %v696_v4  ;;  %v701_v24 = vmul.f32 %v1430_v57, %v1430_v57 }
 0x14a   :  { %v760_v0 = vadd.f32 %v759_v2, %v697_v8  ;;  %v627_v30 = vadd.f32 %v626_v21, %v1360_v39  ;;  %v702_v39 = vmul.f32 %v1454_v28, %v1454_v28 }
 0x14c   :  { %v628_v34 = vadd.f32 %v627_v30, %v1381_v62  ;;  %v761_v32 = vadd.f32 %v760_v0, %v698_v12 }
 0x14e   :  { %v629_v40 = vadd.f32 %v628_v34, %v1402_v37  ;;  %v762_v42 = vadd.f32 %v761_v32, %v699_v16 }
 0x150   :  { %v630_v6 = vadd.f32 %v629_v40, %v1430_v57  ;;  %v763_v7 = vadd.f32 %v762_v42, %v700_v20 }
 0x152   :  { %v631_v43 = vadd.f32 %v630_v6, %v1454_v28  ;;  %v764_v44 = vadd.f32 %v763_v7, %v701_v24 }
 0x154   :  { %v632_v62 = vadd.f32 %v631_v43, %v1478_v31  ;;  %v765_v10 = vadd.f32 %v764_v44, %v702_v39 }
 0x156   :  { %v766_v37 = vadd.f32 %v765_v10, %v703_v11  ;;  %v633_v15 = vadd.f32 %v632_v62, %v1500_v47 }
 0x158   :  { %v767_v57 = vadd.f32 %v766_v37, %v704_v14  ;;  %v634_v46 = vadd.f32 %v633_v15, %v1518_v50 }
 0x15a   :  { %v768_v28 = vadd.f32 %v767_v57, %v705_v18  ;;  %v635_v48 = vadd.f32 %v634_v46, %v1536_v3 }
 0x15c   :  { %v769_v31 = vadd.f32 %v768_v28, %v706_v49  ;;  %v636_v51 = vadd.f32 %v635_v48, %v1554_v19 }
 0x15e   :  { %v637_v52 = vrot.slane %v636_v51, 4  ;;  %v770_v47 = vadd.f32 %v769_v31, %v707_v23 }
 0x160   :  { %v638_v38 = vadd.f32 %v637_v52, %v636_v51  ;;  %v771_v35 = vrot.slane %v770_v47, 4 }
 0x162   :  { %v639_v41 = vrot.slane %v638_v38, 2  ;;  %v772_v59 = vadd.f32 %v771_v35, %v770_v47 }
 0x164   :  { %v640_v22 = vadd.f32 %v639_v41, %v638_v38  ;;  %v773_v50 = vrot.slane %v772_v59, 2 }
 0x166   :  { %v641_v58 = vrot.slane %v640_v22, 1  ;;  %v774_v33 = vadd.f32 %v773_v50, %v772_v59 }
 0x168   :  { %v642_v1 = vadd.f32 %v641_v58, %v640_v22  ;;  %v775_v5 = vrot.slane %v774_v33, 1 }
 0x16a   :  { %643 = vst [vmem:[%s1632_s3] sm:$0x1] %v642_v1  ;;  %v776_v3 = vadd.f32 %v775_v5, %v774_v33 }
 0x16c   :  { %777 = vst [vmem:[%s1632_s3 + $0x1] sm:$0x1] %v776_v3 }

// kernel: relu_bn_convtranspose2d.10
= control target key start
LH: loop header
LB: loop body
LE: loop exit
PB: predicated region body
PF: predicated region fallthrough
CT: control target
= control target key end

     0   :  { %vm336_vm0 = vcmask 1043456   ;;  %vm239_vm1 = vcmask 64512   ;;  %s1629_s1 = inlined_call_operand.vmem [shape: bf16[8,128], index: 1, kind: input, shape index: {}]   ;;  %s1630_s0 = inlined_call_operand.vmem [shape: bf16[512,8], index: 0, kind: input, shape index: {}]   ;;  %s1631_s2 = inlined_call_operand.vmem [shape: f32[512,128], index: 2, kind: output, shape index: {0}]   ;;  %s1632_s3 = inlined_call_operand.vmem [shape: f32[8,128], index: 3, kind: output, shape index: {1}]  }
   0x1   :  { %v78_v0 = vld [vmem:[%s1629_s1] sm:$0xf]  ;;  %v947_v4 = vld [vmem:[%s1630_s0 + $0x8] sm:$0xff]  ;;  %v948_v7 = vld [vmem:[%s1630_s0 + $0x10] sm:$0xff] }
   0x2   :  { %v338_v1 = vsel %vm336_vm0, %v78_v0, 0  ;;  %v946_v2 = vld [vmem:[%s1630_s0] sm:$0xff]  ;;  %v955_v5 = vld [vmem:[%s1630_s0 + $0x48] sm:$0xff]  ;;  %v956_v8 = vld [vmem:[%s1630_s0 + $0x50] sm:$0xff] }
   0x3   :  { %v954_v3 = vld [vmem:[%s1630_s0 + $0x40] sm:$0xff]  ;;  %347 = vmatpush.bf16.msra.mxu0 %v338_v1  ;;  %978 = vmatpush.bf16.msra.mxu1 %v338_v1  ;;  %v963_v9 = vld [vmem:[%s1630_s0 + $0x88] sm:$0xff]  ;;  %v949_v10 = vld [vmem:[%s1630_s0 + $0x18] sm:$0xff] }
   0x4   :  { %979 = vmatpush.bf16.msra.mxu2 %v338_v1  ;;  %980 = vmatpush.bf16.msra.mxu3 %v338_v1  ;;  %v962_v6 = vld [vmem:[%s1630_s0 + $0x80] sm:$0xff]  ;;  %v957_v11 = vld [vmem:[%s1630_s0 + $0x58] sm:$0xff]  ;;  %v964_v12 = vld [vmem:[%s1630_s0 + $0x90] sm:$0xff] }
   0x5   :  { %v970_v13 = vld [vmem:[%s1630_s0 + $0xc0] sm:$0xff]  ;;  %v965_v16 = vld [vmem:[%s1630_s0 + $0x98] sm:$0xff]  ;;  %v971_v17 = vld [vmem:[%s1630_s0 + $0xc8] sm:$0xff] }
   0x6   :  { %914 = vmatmul.msk.bf16.vlgmr.msra.gmra.mxu0 %vm239_vm1, %v946_v2  ;;  %922 = vmatmul.msk.bf16.vlgmr.msra.gmra.mxu1 %vm239_vm1, %v954_v3  ;;  %v950_v14 = vld [vmem:[%s1630_s0 + $0x20] sm:$0xff]  ;;  %v951_v18 = vld [vmem:[%s1630_s0 + $0x28] sm:$0xff]  ;;  %v972_v21 = vld [vmem:[%s1630_s0 + $0xd0] sm:$0xff] }
   0x7   :  { %930 = vmatmul.msk.bf16.vlgmr.msra.gmra.mxu2 %vm239_vm1, %v962_v6  ;;  %938 = vmatmul.msk.bf16.vlgmr.msra.gmra.mxu3 %vm239_vm1, %v970_v13  ;;  %v958_v15 = vld [vmem:[%s1630_s0 + $0x60] sm:$0xff]  ;;  %v959_v19 = vld [vmem:[%s1630_s0 + $0x68] sm:$0xff]  ;;  %v952_v22 = vld [vmem:[%s1630_s0 + $0x30] sm:$0xff] }
   0x8   :  { %v966_v20 = vld [vmem:[%s1630_s0 + $0xa0] sm:$0xff]  ;;  %v960_v23 = vld [vmem:[%s1630_s0 + $0x70] sm:$0xff]  ;;  %v967_v24 = vld [vmem:[%s1630_s0 + $0xa8] sm:$0xff] }
   0x9   :  { %v973_v25 = vld [vmem:[%s1630_s0 + $0xd8] sm:$0xff]  ;;  %v968_v28 = vld [vmem:[%s1630_s0 + $0xb0] sm:$0xff]  ;;  %v974_v29 = vld [vmem:[%s1630_s0 + $0xe0] sm:$0xff] }
   0xa   :  { %v953_v26 = vld [vmem:[%s1630_s0 + $0x38] sm:$0xff]  ;;  %v975_v33 = vld [vmem:[%s1630_s0 + $0xe8] sm:$0xff]  ;;  %v976_v45 = vld [vmem:[%s1630_s0 + $0xf0] sm:$0xff] }
   0xb   :  { %v961_v27 = vld [vmem:[%s1630_s0 + $0x78] sm:$0xff] }
   0xc   :  { %v969_v32 = vld [vmem:[%s1630_s0 + $0xb8] sm:$0xff] }
   0xd   :  { %v977_v58 = vld [vmem:[%s1630_s0 + $0xf8] sm:$0xff] }
  0x16   :  { %915 = vmatmul.msk.bf16.gmra.mxu0 %vm239_vm1, %v947_v4  ;;  %923 = vmatmul.msk.bf16.gmra.mxu1 %vm239_vm1, %v955_v5 }
  0x17   :  { %931 = vmatmul.msk.bf16.gmra.mxu2 %vm239_vm1, %v963_v9  ;;  %939 = vmatmul.msk.bf16.gmra.mxu3 %vm239_vm1, %v971_v17 }
  0x26   :  { %916 = vmatmul.msk.bf16.gmra.mxu0 %vm239_vm1, %v948_v7  ;;  %924 = vmatmul.msk.bf16.gmra.mxu1 %vm239_vm1, %v956_v8 }
  0x27   :  { %932 = vmatmul.msk.bf16.gmra.mxu2 %vm239_vm1, %v964_v12  ;;  %940 = vmatmul.msk.bf16.gmra.mxu3 %vm239_vm1, %v972_v21 }
  0x36   :  { %917 = vmatmul.msk.bf16.gmra.mxu0 %vm239_vm1, %v949_v10  ;;  %925 = vmatmul.msk.bf16.gmra.mxu1 %vm239_vm1, %v957_v11 }
  0x37   :  { %933 = vmatmul.msk.bf16.gmra.mxu2 %vm239_vm1, %v965_v16  ;;  %941 = vmatmul.msk.bf16.gmra.mxu3 %vm239_vm1, %v973_v25 }
  0x46   :  { %918 = vmatmul.msk.bf16.gmra.mxu0 %vm239_vm1, %v950_v14  ;;  %926 = vmatmul.msk.bf16.gmra.mxu1 %vm239_vm1, %v958_v15 }
  0x47   :  { %934 = vmatmul.msk.bf16.gmra.mxu2 %vm239_vm1, %v966_v20  ;;  %942 = vmatmul.msk.bf16.gmra.mxu3 %vm239_vm1, %v974_v29 }
  0x56   :  { %919 = vmatmul.msk.bf16.gmra.mxu0 %vm239_vm1, %v951_v18  ;;  %927 = vmatmul.msk.bf16.gmra.mxu1 %vm239_vm1, %v959_v19 }
  0x57   :  { %935 = vmatmul.msk.bf16.gmra.mxu2 %vm239_vm1, %v967_v24  ;;  %943 = vmatmul.msk.bf16.gmra.mxu3 %vm239_vm1, %v975_v33 }
  0x66   :  { %920 = vmatmul.msk.bf16.gmra.mxu0 %vm239_vm1, %v952_v22  ;;  %928 = vmatmul.msk.bf16.gmra.mxu1 %vm239_vm1, %v960_v23 }
  0x67   :  { %936 = vmatmul.msk.bf16.gmra.mxu2 %vm239_vm1, %v968_v28  ;;  %944 = vmatmul.msk.bf16.gmra.mxu3 %vm239_vm1, %v976_v45 }
  0x76   :  { %921 = vmatmul.msk.bf16.gmra.mxu0 %vm239_vm1, %v953_v26  ;;  %929 = vmatmul.msk.bf16.gmra.mxu1 %vm239_vm1, %v961_v27 }
  0x77   :  { %937 = vmatmul.msk.bf16.gmra.mxu2 %vm239_vm1, %v969_v32  ;;  %945 = vmatmul.msk.bf16.gmra.mxu3 %vm239_vm1, %v977_v58 }
  0x83   :  { %v349_v30 = vpop.f32.mrf.mxu0  ;;  %v1118_v31 = vpop.f32.mrf.mxu1 }
  0x84   :  { %509 = vst [vmem:[%s1631_s2] sm:$0xff] %v349_v30  ;;  %v644_v36 = vmul.f32 %v349_v30, %v349_v30 }
  0x85   :  { %525 = vst [vmem:[%s1631_s2 + $0x80] sm:$0xff] %v1118_v31 }
  0x8a   :  { %v1162_v50 = vpop.f32.mrf.mxu2  ;;  %v1232_v4 = vpop.f32.mrf.mxu3 }
  0x8b   :  { %v351_v34 = vpop.f32.mrf.mxu0  ;;  %v1135_v35 = vpop.f32.mrf.mxu1  ;;  %541 = vst [vmem:[%s1631_s2 + $0x100] sm:$0xff] %v1162_v50 }
  0x8c   :  { %510 = vst [vmem:[%s1631_s2 + $0x8] sm:$0xff] %v351_v34  ;;  %v574_v37 = vadd.f32 %v351_v34, %v349_v30  ;;  %v645_v38 = vmul.f32 %v351_v34, %v351_v34 }
  0x8d   :  { %526 = vst [vmem:[%s1631_s2 + $0x88] sm:$0xff] %v1135_v35 }
  0x8e   :  { %v708_v39 = vadd.f32 %v645_v38, %v644_v36  ;;  %557 = vst [vmem:[%s1631_s2 + $0x180] sm:$0xff] %v1232_v4 }
  0x92   :  { %v1179_v56 = vpop.f32.mrf.mxu2  ;;  %v1253_v8 = vpop.f32.mrf.mxu3 }
  0x93   :  { %v354_v40 = vpop.f32.mrf.mxu0  ;;  %v1144_v41 = vpop.f32.mrf.mxu1  ;;  %542 = vst [vmem:[%s1631_s2 + $0x108] sm:$0xff] %v1179_v56 }
  0x94   :  { %511 = vst [vmem:[%s1631_s2 + $0x10] sm:$0xff] %v354_v40  ;;  %v575_v42 = vadd.f32 %v574_v37, %v354_v40  ;;  %v646_v43 = vmul.f32 %v354_v40, %v354_v40 }
  0x95   :  { %527 = vst [vmem:[%s1631_s2 + $0x90] sm:$0xff] %v1144_v41 }
  0x96   :  { %v709_v44 = vadd.f32 %v708_v39, %v646_v43  ;;  %558 = vst [vmem:[%s1631_s2 + $0x188] sm:$0xff] %v1253_v8 }
  0x9a   :  { %v1200_v61 = vpop.f32.mrf.mxu2  ;;  %v1274_v12 = vpop.f32.mrf.mxu3 }
  0x9b   :  { %v356_v46 = vpop.f32.mrf.mxu0  ;;  %v1157_v47 = vpop.f32.mrf.mxu1  ;;  %543 = vst [vmem:[%s1631_s2 + $0x110] sm:$0xff] %v1200_v61 }
  0x9c   :  { %512 = vst [vmem:[%s1631_s2 + $0x18] sm:$0xff] %v356_v46  ;;  %v576_v48 = vadd.f32 %v575_v42, %v356_v46  ;;  %v647_v49 = vmul.f32 %v356_v46, %v356_v46 }
  0x9d   :  { %528 = vst [vmem:[%s1631_s2 + $0x98] sm:$0xff] %v1157_v47 }
  0x9e   :  { %v710_v51 = vadd.f32 %v709_v44, %v647_v49  ;;  %559 = vst [vmem:[%s1631_s2 + $0x190] sm:$0xff] %v1274_v12 }
  0xa2   :  { %v1215_v0 = vpop.f32.mrf.mxu2  ;;  %v1295_v16 = vpop.f32.mrf.mxu3 }
  0xa3   :  { %v359_v52 = vpop.f32.mrf.mxu0  ;;  %v1172_v53 = vpop.f32.mrf.mxu1  ;;  %544 = vst [vmem:[%s1631_s2 + $0x118] sm:$0xff] %v1215_v0 }
  0xa4   :  { %513 = vst [vmem:[%s1631_s2 + $0x20] sm:$0xff] %v359_v52  ;;  %v1177_v54 = vadd.f32 %v576_v48, %v359_v52  ;;  %v648_v55 = vmul.f32 %v359_v52, %v359_v52 }
  0xa5   :  { %529 = vst [vmem:[%s1631_s2 + $0xa0] sm:$0xff] %v1172_v53 }
  0xa6   :  { %v1185_v57 = vadd.f32 %v710_v51, %v648_v55  ;;  %560 = vst [vmem:[%s1631_s2 + $0x198] sm:$0xff] %v1295_v16 }
  0xaa   :  { %v1230_v3 = vpop.f32.mrf.mxu2  ;;  %v1316_v20 = vpop.f32.mrf.mxu3 }
  0xab   :  { %v361_v59 = vpop.f32.mrf.mxu0  ;;  %v1195_v60 = vpop.f32.mrf.mxu1  ;;  %545 = vst [vmem:[%s1631_s2 + $0x120] sm:$0xff] %v1230_v3 }
  0xac   :  { %514 = vst [vmem:[%s1631_s2 + $0x28] sm:$0xff] %v361_v59  ;;  %v649_v25 = vmul.f32 %v361_v59, %v361_v59  ;;  %v578_v26 = vadd.f32 %v1177_v54, %v361_v59 }
  0xad   :  { %530 = vst [vmem:[%s1631_s2 + $0xa8] sm:$0xff] %v1195_v60 }
  0xae   :  { %561 = vst [vmem:[%s1631_s2 + $0x1a0] sm:$0xff] %v1316_v20  ;;  %v712_v28 = vadd.f32 %v1185_v57, %v649_v25 }
  0xb2   :  { %v1251_v7 = vpop.f32.mrf.mxu2  ;;  %v1337_v24 = vpop.f32.mrf.mxu3 }
  0xb3   :  { %v364_v62 = vpop.f32.mrf.mxu0  ;;  %v1210_v63 = vpop.f32.mrf.mxu1  ;;  %546 = vst [vmem:[%s1631_s2 + $0x128] sm:$0xff] %v1251_v7 }
  0xb4   :  { %515 = vst [vmem:[%s1631_s2 + $0x30] sm:$0xff] %v364_v62  ;;  %v650_v27 = vmul.f32 %v364_v62, %v364_v62  ;;  %v579_v29 = vadd.f32 %v578_v26, %v364_v62 }
  0xb5   :  { %531 = vst [vmem:[%s1631_s2 + $0xb0] sm:$0xff] %v1210_v63 }
  0xb6   :  { %562 = vst [vmem:[%s1631_s2 + $0x1a8] sm:$0xff] %v1337_v24  ;;  %v713_v34 = vadd.f32 %v712_v28, %v650_v27 }
  0xba   :  { %v1272_v11 = vpop.f32.mrf.mxu2  ;;  %v1360_v39 = vpop.f32.mrf.mxu3 }
  0xbb   :  { %v366_v1 = vpop.f32.mrf.mxu0  ;;  %v1225_v2 = vpop.f32.mrf.mxu1  ;;  %547 = vst [vmem:[%s1631_s2 + $0x130] sm:$0xff] %v1272_v11 }
  0xbc   :  { %516 = vst [vmem:[%s1631_s2 + $0x38] sm:$0xff] %v366_v1  ;;  %v651_v30 = vmul.f32 %v366_v1, %v366_v1  ;;  %v580_v36 = vadd.f32 %v579_v29, %v366_v1 }
  0xbd   :  { %532 = vst [vmem:[%s1631_s2 + $0xb8] sm:$0xff] %v1225_v2 }
  0xbe   :  { %v714_v40 = vadd.f32 %v713_v34, %v651_v30  ;;  %563 = vst [vmem:[%s1631_s2 + $0x1b0] sm:$0xff] %v1360_v39 }
  0xc2   :  { %v1293_v15 = vpop.f32.mrf.mxu2  ;;  %v1381_v62 = vpop.f32.mrf.mxu3 }
  0xc3   :  { %v369_v5 = vpop.f32.mrf.mxu0  ;;  %v1246_v6 = vpop.f32.mrf.mxu1  ;;  %548 = vst [vmem:[%s1631_s2 + $0x138] sm:$0xff] %v1293_v15 }
  0xc4   :  { %517 = vst [vmem:[%s1631_s2 + $0x40] sm:$0xff] %v369_v5  ;;  %v652_v37 = vmul.f32 %v369_v5, %v369_v5  ;;  %v581_v42 = vadd.f32 %v580_v36, %v369_v5 }
  0xc5   :  { %533 = vst [vmem:[%s1631_s2 + $0xc0] sm:$0xff] %v1246_v6 }
  0xc6   :  { %v715_v44 = vadd.f32 %v714_v40, %v652_v37  ;;  %564 = vst [vmem:[%s1631_s2 + $0x1b8] sm:$0xff] %v1381_v62 }
  0xca   :  { %v1314_v19 = vpop.f32.mrf.mxu2  ;;  %v1402_v37 = vpop.f32.mrf.mxu3 }
  0xcb   :  { %v371_v9 = vpop.f32.mrf.mxu0  ;;  %v1267_v10 = vpop.f32.mrf.mxu1  ;;  %549 = vst [vmem:[%s1631_s2 + $0x140] sm:$0xff] %v1314_v19 }
  0xcc   :  { %518 = vst [vmem:[%s1631_s2 + $0x48] sm:$0xff] %v371_v9  ;;  %v653_v43 = vmul.f32 %v371_v9, %v371_v9  ;;  %v582_v45 = vadd.f32 %v581_v42, %v371_v9 }
  0xcd   :  { %534 = vst [vmem:[%s1631_s2 + $0xc8] sm:$0xff] %v1267_v10 }
  0xce   :  { %v716_v48 = vadd.f32 %v715_v44, %v653_v43  ;;  %565 = vst [vmem:[%s1631_s2 + $0x1c0] sm:$0xff] %v1402_v37  ;;  %v661_v43 = vmul.f32 %v1135_v35, %v1135_v35 }
  0xd2   :  { %v1335_v23 = vpop.f32.mrf.mxu2 }
  0xd3   :  { %v374_v13 = vpop.f32.mrf.mxu0  ;;  %v1288_v14 = vpop.f32.mrf.mxu1  ;;  %550 = vst [vmem:[%s1631_s2 + $0x148] sm:$0xff] %v1335_v23 }
  0xd4   :  { %519 = vst [vmem:[%s1631_s2 + $0x50] sm:$0xff] %v374_v13  ;;  %v654_v46 = vmul.f32 %v374_v13, %v374_v13  ;;  %v583_v49 = vadd.f32 %v582_v45, %v374_v13 }
  0xd5   :  { %535 = vst [vmem:[%s1631_s2 + $0xd0] sm:$0xff] %v1288_v14 }
  0xd6   :  { %v717_v55 = vadd.f32 %v716_v48, %v654_v46 }
  0xda   :  { %v1358_v38 = vpop.f32.mrf.mxu2 }
  0xdb   :  { %v376_v17 = vpop.f32.mrf.mxu0  ;;  %v1309_v18 = vpop.f32.mrf.mxu1  ;;  %551 = vst [vmem:[%s1631_s2 + $0x150] sm:$0xff] %v1358_v38 }
  0xdc   :  { %520 = vst [vmem:[%s1631_s2 + $0x58] sm:$0xff] %v376_v17  ;;  %v655_v51 = vmul.f32 %v376_v17, %v376_v17  ;;  %v584_v57 = vadd.f32 %v583_v49, %v376_v17  ;;  %v663_v49 = vmul.f32 %v1157_v47, %v1157_v47 }
  0xdd   :  { %536 = vst [vmem:[%s1631_s2 + $0xd8] sm:$0xff] %v1309_v18 }
  0xde   :  { %v718_v1 = vadd.f32 %v717_v55, %v655_v51 }
  0xe2   :  { %v1379_v59 = vpop.f32.mrf.mxu2 }
  0xe3   :  { %v379_v21 = vpop.f32.mrf.mxu0  ;;  %v1330_v22 = vpop.f32.mrf.mxu1  ;;  %552 = vst [vmem:[%s1631_s2 + $0x158] sm:$0xff] %v1379_v59 }
  0xe4   :  { %521 = vst [vmem:[%s1631_s2 + $0x60] sm:$0xff] %v379_v21  ;;  %v656_v58 = vmul.f32 %v379_v21, %v379_v21  ;;  %v585_v5 = vadd.f32 %v584_v57, %v379_v21  ;;  %v1430_v57 = vpop.f32.mrf.mxu3 }
  0xe5   :  { %537 = vst [vmem:[%s1631_s2 + $0xe0] sm:$0xff] %v1330_v22 }
  0xe6   :  { %v719_v13 = vadd.f32 %v718_v1, %v656_v58  ;;  %566 = vst [vmem:[%s1631_s2 + $0x1c8] sm:$0xff] %v1430_v57 }
  0xea   :  { %v1400_v36 = vpop.f32.mrf.mxu2 }
  0xeb   :  { %v381_v32 = vpop.f32.mrf.mxu0  ;;  %v1353_v33 = vpop.f32.mrf.mxu1  ;;  %553 = vst [vmem:[%s1631_s2 + $0x160] sm:$0xff] %v1400_v36 }
  0xec   :  { %522 = vst [vmem:[%s1631_s2 + $0x68] sm:$0xff] %v381_v32  ;;  %v657_v9 = vmul.f32 %v381_v32, %v381_v32  ;;  %v586_v17 = vadd.f32 %v585_v5, %v381_v32  ;;  %v660_v32 = vmul.f32 %v1118_v31, %v1118_v31 }
  0xed   :  { %538 = vst [vmem:[%s1631_s2 + $0xe8] sm:$0xff] %v1353_v33 }
  0xee   :  { %v720_v26 = vadd.f32 %v719_v13, %v657_v9  ;;  %v666_v9 = vmul.f32 %v1210_v63, %v1210_v63 }
  0xf2   :  { %v1428_v55 = vpop.f32.mrf.mxu2 }
  0xf3   :  { %v384_v52 = vpop.f32.mrf.mxu0  ;;  %v1374_v54 = vpop.f32.mrf.mxu1  ;;  %554 = vst [vmem:[%s1631_s2 + $0x168] sm:$0xff] %v1428_v55 }
  0xf4   :  { %523 = vst [vmem:[%s1631_s2 + $0x70] sm:$0xff] %v384_v52  ;;  %v658_v25 = vmul.f32 %v384_v52, %v384_v52  ;;  %v587_v27 = vadd.f32 %v586_v17, %v384_v52 }
  0xf5   :  { %539 = vst [vmem:[%s1631_s2 + $0xf0] sm:$0xff] %v1374_v54 }
  0xf6   :  { %v721_v21 = vadd.f32 %v720_v26, %v658_v25 }
  0xfb   :  { %v386_v28 = vpop.f32.mrf.mxu0  ;;  %v1395_v29 = vpop.f32.mrf.mxu1 }
  0xfc   :  { %524 = vst [vmem:[%s1631_s2 + $0x78] sm:$0xff] %v386_v28  ;;  %v588_v30 = vadd.f32 %v587_v27, %v386_v28  ;;  %v659_v34 = vmul.f32 %v386_v28, %v386_v28  ;;  %v1452_v27 = vpop.f32.mrf.mxu2  ;;  %v1454_v28 = vpop.f32.mrf.mxu3 }
  0xfd   :  { %540 = vst [vmem:[%s1631_s2 + $0xf8] sm:$0xff] %v1395_v29 }
  0xfe   :  { %v589_v40 = vadd.f32 %v588_v30, %v1118_v31  ;;  %v722_v42 = vadd.f32 %v721_v21, %v659_v34  ;;  %v662_v31 = vmul.f32 %v1144_v41, %v1144_v41  ;;  %555 = vst [vmem:[%s1631_s2 + $0x170] sm:$0xff] %v1452_v27 }
  0xff   :  { %567 = vst [vmem:[%s1631_s2 + $0x1d0] sm:$0xff] %v1454_v28 }
 0x100   :  { %v590_v44 = vadd.f32 %v589_v40, %v1135_v35  ;;  %v723_v45 = vadd.f32 %v722_v42, %v660_v32  ;;  %v664_v35 = vmul.f32 %v1172_v53, %v1172_v53  ;;  %v670_v32 = vmul.f32 %v1288_v14, %v1288_v14 }
 0x102   :  { %v591_v46 = vadd.f32 %v590_v44, %v1144_v41  ;;  %v724_v48 = vadd.f32 %v723_v45, %v661_v43 }
 0x104   :  { %v592_v51 = vadd.f32 %v591_v46, %v1157_v47  ;;  %v725_v52 = vadd.f32 %v724_v48, %v662_v31  ;;  %v665_v47 = vmul.f32 %v1195_v60, %v1195_v60  ;;  %v1476_v45 = vpop.f32.mrf.mxu2  ;;  %v1478_v31 = vpop.f32.mrf.mxu3 }
 0x105   :  { %556 = vst [vmem:[%s1631_s2 + $0x178] sm:$0xff] %v1476_v45 }
 0x106   :  { %v593_v41 = vadd.f32 %v592_v51, %v1172_v53  ;;  %v726_v58 = vadd.f32 %v725_v52, %v663_v49  ;;  %v667_v53 = vmul.f32 %v1225_v2, %v1225_v2  ;;  %568 = vst [vmem:[%s1631_s2 + $0x1d8] sm:$0xff] %v1478_v31  ;;  %v673_v49 = vmul.f32 %v1353_v33, %v1353_v33 }
 0x108   :  { %v594_v1 = vadd.f32 %v593_v41, %v1195_v60  ;;  %v727_v5 = vadd.f32 %v726_v58, %v664_v35  ;;  %v668_v60 = vmul.f32 %v1246_v6, %v1246_v6  ;;  %v674_v35 = vmul.f32 %v1374_v54, %v1374_v54 }
 0x109   :  { %v675_v58 = vmul.f32 %v1395_v29, %v1395_v29 }
 0x10a   :  { %v728_v13 = vadd.f32 %v727_v5, %v665_v47  ;;  %v595_v17 = vadd.f32 %v594_v1, %v1210_v63 }
 0x10c   :  { %v596_v25 = vadd.f32 %v595_v17, %v1225_v2  ;;  %v729_v26 = vadd.f32 %v728_v13, %v666_v9  ;;  %v669_v2 = vmul.f32 %v1267_v10, %v1267_v10  ;;  %v1500_v47 = vpop.f32.mrf.mxu3 }
 0x10d   :  { %569 = vst [vmem:[%s1631_s2 + $0x1e0] sm:$0xff] %v1500_v47 }
 0x10e   :  { %v597_v63 = vadd.f32 %v596_v25, %v1246_v6  ;;  %v730_v21 = vadd.f32 %v729_v26, %v667_v53  ;;  %v671_v6 = vmul.f32 %v1309_v18, %v1309_v18  ;;  %v679_v25 = vmul.f32 %v1215_v0, %v1215_v0 }
 0x110   :  { %v598_v30 = vadd.f32 %v597_v63, %v1267_v10  ;;  %v731_v34 = vadd.f32 %v730_v21, %v668_v60  ;;  %v681_v21 = vmul.f32 %v1251_v7, %v1251_v7 }
 0x112   :  { %v599_v40 = vadd.f32 %v598_v30, %v1288_v14  ;;  %v732_v42 = vadd.f32 %v731_v34, %v669_v2  ;;  %v672_v14 = vmul.f32 %v1330_v22, %v1330_v22  ;;  %v682_v30 = vmul.f32 %v1272_v11, %v1272_v11 }
 0x114   :  { %v600_v43 = vadd.f32 %v599_v40, %v1309_v18  ;;  %v733_v44 = vadd.f32 %v732_v42, %v670_v32  ;;  %v683_v40 = vmul.f32 %v1293_v15, %v1293_v15 }
 0x116   :  { %v601_v10 = vadd.f32 %v600_v43, %v1330_v22  ;;  %v734_v46 = vadd.f32 %v733_v44, %v671_v6 }
 0x118   :  { %v735_v18 = vadd.f32 %v734_v46, %v672_v14  ;;  %v602_v48 = vadd.f32 %v601_v10, %v1353_v33  ;;  %v676_v33 = vmul.f32 %v1162_v50, %v1162_v50  ;;  %v686_v14 = vmul.f32 %v1358_v38, %v1358_v38 }
 0x11a   :  { %v736_v51 = vadd.f32 %v735_v18, %v673_v49  ;;  %v603_v52 = vadd.f32 %v602_v48, %v1374_v54  ;;  %v677_v54 = vmul.f32 %v1179_v56, %v1179_v56  ;;  %v687_v49 = vmul.f32 %v1379_v59, %v1379_v59 }
 0x11c   :  { %v737_v41 = vadd.f32 %v736_v51, %v674_v35  ;;  %v604_v22 = vadd.f32 %v603_v52, %v1395_v29  ;;  %v678_v29 = vmul.f32 %v1200_v61, %v1200_v61 }
 0x11e   :  { %v605_v1 = vadd.f32 %v604_v22, %v1162_v50  ;;  %v738_v5 = vadd.f32 %v737_v41, %v675_v58  ;;  %v1518_v50 = vpop.f32.mrf.mxu3 }
 0x11f   :  { %570 = vst [vmem:[%s1631_s2 + $0x1e8] sm:$0xff] %v1518_v50 }
 0x120   :  { %v606_v9 = vadd.f32 %v605_v1, %v1179_v56  ;;  %v739_v13 = vadd.f32 %v738_v5, %v676_v33  ;;  %v680_v56 = vmul.f32 %v1230_v3, %v1230_v3  ;;  %v690_v33 = vmul.f32 %v1452_v27, %v1452_v27 }
 0x122   :  { %v607_v17 = vadd.f32 %v606_v9, %v1200_v61  ;;  %v740_v53 = vadd.f32 %v739_v13, %v677_v54  ;;  %v691_v54 = vmul.f32 %v1476_v45, %v1476_v45  ;;  %v982_v9 = vmov 0.0  }
 0x123   :  { %573 = vst [vmem:[%s1632_s3] sm:$0xff] %v982_v9 }
 0x124   :  { %v608_v26 = vadd.f32 %v607_v17, %v1215_v0  ;;  %v741_v60 = vadd.f32 %v740_v53, %v678_v29 }
 0x126   :  { %v609_v63 = vadd.f32 %v608_v26, %v1230_v3  ;;  %v742_v61 = vadd.f32 %v741_v60, %v679_v25  ;;  %v1536_v3 = vpop.f32.mrf.mxu3  ;;  %v695_v26 = vmul.f32 %v1295_v16, %v1295_v16 }
 0x127   :  { %571 = vst [vmem:[%s1631_s2 + $0x1f0] sm:$0xff] %v1536_v3 }
 0x128   :  { %v610_v2 = vadd.f32 %v609_v63, %v1251_v7  ;;  %v743_v0 = vadd.f32 %v742_v61, %v680_v56  ;;  %v684_v7 = vmul.f32 %v1314_v19, %v1314_v19 }
 0x12a   :  { %v744_v34 = vadd.f32 %v743_v0, %v681_v21  ;;  %v611_v32 = vadd.f32 %v610_v2, %v1272_v11  ;;  %v685_v11 = vmul.f32 %v1335_v23, %v1335_v23 }
 0x12c   :  { %v612_v42 = vadd.f32 %v611_v32, %v1293_v15  ;;  %v745_v6 = vadd.f32 %v744_v34, %v682_v30 }
 0x12e   :  { %v613_v43 = vadd.f32 %v612_v42, %v1314_v19  ;;  %v746_v44 = vadd.f32 %v745_v6, %v683_v40  ;;  %v1554_v19 = vpop.f32.mrf.mxu3 }
 0x12f   :  { %572 = vst [vmem:[%s1631_s2 + $0x1f8] sm:$0xff] %v1554_v19 }
 0x130   :  { %v614_v10 = vadd.f32 %v613_v43, %v1335_v23  ;;  %v747_v15 = vadd.f32 %v746_v44, %v684_v7 }
 0x132   :  { %v615_v46 = vadd.f32 %v614_v10, %v1358_v38  ;;  %v748_v18 = vadd.f32 %v747_v15, %v685_v11  ;;  %v688_v38 = vmul.f32 %v1400_v36, %v1400_v36  ;;  %v703_v11 = vmul.f32 %v1478_v31, %v1478_v31 }
 0x134   :  { %v616_v48 = vadd.f32 %v615_v46, %v1379_v59  ;;  %v749_v51 = vadd.f32 %v748_v18, %v686_v14  ;;  %v689_v59 = vmul.f32 %v1428_v55, %v1428_v55  ;;  %v704_v14 = vmul.f32 %v1500_v47, %v1500_v47 }
 0x135   :  { %v705_v18 = vmul.f32 %v1518_v50, %v1518_v50 }
 0x136   :  { %v750_v23 = vadd.f32 %v749_v51, %v687_v49  ;;  %v617_v52 = vadd.f32 %v616_v48, %v1400_v36  ;;  %v692_v36 = vmul.f32 %v1232_v4, %v1232_v4  ;;  %v706_v49 = vmul.f32 %v1536_v3, %v1536_v3 }
 0x138   :  { %v751_v35 = vadd.f32 %v750_v23, %v688_v38  ;;  %v618_v41 = vadd.f32 %v617_v52, %v1428_v55  ;;  %v707_v23 = vmul.f32 %v1554_v19, %v1554_v19 }
 0x13a   :  { %v752_v22 = vadd.f32 %v751_v35, %v689_v59  ;;  %v619_v58 = vadd.f32 %v618_v41, %v1452_v27  ;;  %v693_v27 = vmul.f32 %v1253_v8, %v1253_v8 }
 0x13c   :  { %v753_v1 = vadd.f32 %v752_v22, %v690_v33  ;;  %v620_v5 = vadd.f32 %v619_v58, %v1476_v45  ;;  %v694_v45 = vmul.f32 %v1274_v12, %v1274_v12 }
 0x13e   :  { %v621_v55 = vadd.f32 %v620_v5, %v1232_v4  ;;  %v754_v13 = vadd.f32 %v753_v1, %v691_v54  ;;  %v696_v4 = vmul.f32 %v1316_v20, %v1316_v20 }
 0x140   :  { %v622_v29 = vadd.f32 %v621_v55, %v1253_v8  ;;  %v755_v17 = vadd.f32 %v754_v13, %v692_v36  ;;  %v697_v8 = vmul.f32 %v1337_v24, %v1337_v24 }
 0x142   :  { %v623_v53 = vadd.f32 %v622_v29, %v1274_v12  ;;  %v756_v25 = vadd.f32 %v755_v17, %v693_v27  ;;  %v698_v12 = vmul.f32 %v1360_v39, %v1360_v39 }
 0x144   :  { %v624_v60 = vadd.f32 %v623_v53, %v1295_v16  ;;  %v757_v56 = vadd.f32 %v756_v25, %v694_v45  ;;  %v699_v16 = vmul.f32 %v1381_v62, %v1381_v62 }
 0x146   :  { %v625_v63 = vadd.f32 %v624_v60, %v1316_v20  ;;  %v758_v61 = vadd.f32 %v757_v56, %v695_v26  ;;  %v700_v20 = vmul.f32 %v1402_v37, %v1402_v37 }
 0x148   :  { %v626_v21 = vadd.f32 %v625_v63, %v1337_v24  ;;  %v759_v2 = vadd.f32 %v758_v61, %v696_v4  ;;  %v701_v24 = vmul.f32 %v1430_v57, %v1430_v57 }
 0x14a   :  { %v760_v0 = vadd.f32 %v759_v2, %v697_v8  ;;  %v627_v30 = vadd.f32 %v626_v21, %v1360_v39  ;;  %v702_v39 = vmul.f32 %v1454_v28, %v1454_v28 }
 0x14c   :  { %v628_v34 = vadd.f32 %v627_v30, %v1381_v62  ;;  %v761_v32 = vadd.f32 %v760_v0, %v698_v12 }
 0x14e   :  { %v629_v40 = vadd.f32 %v628_v34, %v1402_v37  ;;  %v762_v42 = vadd.f32 %v761_v32, %v699_v16 }
 0x150   :  { %v630_v6 = vadd.f32 %v629_v40, %v1430_v57  ;;  %v763_v7 = vadd.f32 %v762_v42, %v700_v20 }
 0x152   :  { %v631_v43 = vadd.f32 %v630_v6, %v1454_v28  ;;  %v764_v44 = vadd.f32 %v763_v7, %v701_v24 }
 0x154   :  { %v632_v62 = vadd.f32 %v631_v43, %v1478_v31  ;;  %v765_v10 = vadd.f32 %v764_v44, %v702_v39 }
 0x156   :  { %v766_v37 = vadd.f32 %v765_v10, %v703_v11  ;;  %v633_v15 = vadd.f32 %v632_v62, %v1500_v47 }
 0x158   :  { %v767_v57 = vadd.f32 %v766_v37, %v704_v14  ;;  %v634_v46 = vadd.f32 %v633_v15, %v1518_v50 }
 0x15a   :  { %v768_v28 = vadd.f32 %v767_v57, %v705_v18  ;;  %v635_v48 = vadd.f32 %v634_v46, %v1536_v3 }
 0x15c   :  { %v769_v31 = vadd.f32 %v768_v28, %v706_v49  ;;  %v636_v51 = vadd.f32 %v635_v48, %v1554_v19 }
 0x15e   :  { %v637_v52 = vrot.slane %v636_v51, 4  ;;  %v770_v47 = vadd.f32 %v769_v31, %v707_v23 }
 0x160   :  { %v638_v38 = vadd.f32 %v637_v52, %v636_v51  ;;  %v771_v35 = vrot.slane %v770_v47, 4 }
 0x162   :  { %v639_v41 = vrot.slane %v638_v38, 2  ;;  %v772_v59 = vadd.f32 %v771_v35, %v770_v47 }
 0x164   :  { %v640_v22 = vadd.f32 %v639_v41, %v638_v38  ;;  %v773_v50 = vrot.slane %v772_v59, 2 }
 0x166   :  { %v641_v58 = vrot.slane %v640_v22, 1  ;;  %v774_v33 = vadd.f32 %v773_v50, %v772_v59 }
 0x168   :  { %v642_v1 = vadd.f32 %v641_v58, %v640_v22  ;;  %v775_v5 = vrot.slane %v774_v33, 1 }
 0x16a   :  { %643 = vst [vmem:[%s1632_s3] sm:$0x1] %v642_v1  ;;  %v776_v3 = vadd.f32 %v775_v5, %v774_v33 }
 0x16c   :  { %777 = vst [vmem:[%s1632_s3 + $0x1] sm:$0x1] %v776_v3 }

// kernel: relu_bn_convtranspose2d.8
= control target key start
LH: loop header
LB: loop body
LE: loop exit
PB: predicated region body
PF: predicated region fallthrough
CT: control target
= control target key end

     0   :  { %vm246_vm0 = vcmask 130048   ;;  %s1637_s1 = inlined_call_operand.vmem [shape: bf16[16,128], index: 1, kind: input, shape index: {}]   ;;  %s1638_s0 = inlined_call_operand.vmem [shape: bf16[512,16], index: 0, kind: input, shape index: {}]   ;;  %s1639_s2 = inlined_call_operand.vmem [shape: f32[512,128], index: 2, kind: output, shape index: {0}]   ;;  %s1640_s3 = inlined_call_operand.vmem [shape: f32[8,128], index: 3, kind: output, shape index: {1}]  }
   0x1   :  { %v985_v0 = vld [vmem:[%s1637_s1] sm:$0xff]  ;;  %v954_v3 = vld [vmem:[%s1638_s0 + $0x8] sm:$0xff]  ;;  %v955_v6 = vld [vmem:[%s1638_s0 + $0x10] sm:$0xff] }
   0x2   :  { %v953_v1 = vld [vmem:[%s1638_s0] sm:$0xff]  ;;  %350 = vmatpush.bf16.msra.mxu0 %v985_v0  ;;  %986 = vmatpush.bf16.msra.mxu1 %v985_v0  ;;  %v962_v4 = vld [vmem:[%s1638_s0 + $0x48] sm:$0xff]  ;;  %v963_v7 = vld [vmem:[%s1638_s0 + $0x50] sm:$0xff] }
   0x3   :  { %v961_v2 = vld [vmem:[%s1638_s0 + $0x40] sm:$0xff]  ;;  %987 = vmatpush.bf16.msra.mxu2 %v985_v0  ;;  %988 = vmatpush.bf16.msra.mxu3 %v985_v0  ;;  %v970_v8 = vld [vmem:[%s1638_s0 + $0x88] sm:$0xff]  ;;  %v956_v9 = vld [vmem:[%s1638_s0 + $0x18] sm:$0xff] }
   0x4   :  { %v969_v5 = vld [vmem:[%s1638_s0 + $0x80] sm:$0xff]  ;;  %v964_v10 = vld [vmem:[%s1638_s0 + $0x58] sm:$0xff]  ;;  %v971_v11 = vld [vmem:[%s1638_s0 + $0x90] sm:$0xff] }
   0x5   :  { %921 = vmatmul.msk.bf16.vlgmr.msra.gmra.mxu0 %vm246_vm0, %v953_v1  ;;  %929 = vmatmul.msk.bf16.vlgmr.msra.gmra.mxu1 %vm246_vm0, %v961_v2  ;;  %v977_v12 = vld [vmem:[%s1638_s0 + $0xc0] sm:$0xff]  ;;  %v972_v15 = vld [vmem:[%s1638_s0 + $0x98] sm:$0xff]  ;;  %v978_v16 = vld [vmem:[%s1638_s0 + $0xc8] sm:$0xff] }
   0x6   :  { %937 = vmatmul.msk.bf16.vlgmr.msra.gmra.mxu2 %vm246_vm0, %v969_v5  ;;  %945 = vmatmul.msk.bf16.vlgmr.msra.gmra.mxu3 %vm246_vm0, %v977_v12  ;;  %v957_v13 = vld [vmem:[%s1638_s0 + $0x20] sm:$0xff]  ;;  %v958_v17 = vld [vmem:[%s1638_s0 + $0x28] sm:$0xff]  ;;  %v979_v20 = vld [vmem:[%s1638_s0 + $0xd0] sm:$0xff] }
   0x7   :  { %v965_v14 = vld [vmem:[%s1638_s0 + $0x60] sm:$0xff]  ;;  %v966_v18 = vld [vmem:[%s1638_s0 + $0x68] sm:$0xff]  ;;  %v959_v21 = vld [vmem:[%s1638_s0 + $0x30] sm:$0xff] }
   0x8   :  { %v973_v19 = vld [vmem:[%s1638_s0 + $0xa0] sm:$0xff]  ;;  %v967_v22 = vld [vmem:[%s1638_s0 + $0x70] sm:$0xff]  ;;  %v974_v23 = vld [vmem:[%s1638_s0 + $0xa8] sm:$0xff] }
   0x9   :  { %v980_v24 = vld [vmem:[%s1638_s0 + $0xd8] sm:$0xff]  ;;  %v975_v27 = vld [vmem:[%s1638_s0 + $0xb0] sm:$0xff]  ;;  %v981_v28 = vld [vmem:[%s1638_s0 + $0xe0] sm:$0xff] }
   0xa   :  { %v960_v25 = vld [vmem:[%s1638_s0 + $0x38] sm:$0xff]  ;;  %v982_v32 = vld [vmem:[%s1638_s0 + $0xe8] sm:$0xff]  ;;  %v983_v44 = vld [vmem:[%s1638_s0 + $0xf0] sm:$0xff] }
   0xb   :  { %v968_v26 = vld [vmem:[%s1638_s0 + $0x78] sm:$0xff] }
   0xc   :  { %v976_v31 = vld [vmem:[%s1638_s0 + $0xb8] sm:$0xff] }
   0xd   :  { %v984_v57 = vld [vmem:[%s1638_s0 + $0xf8] sm:$0xff] }
  0x15   :  { %922 = vmatmul.msk.bf16.gmra.mxu0 %vm246_vm0, %v954_v3  ;;  %930 = vmatmul.msk.bf16.gmra.mxu1 %vm246_vm0, %v962_v4 }
  0x16   :  { %938 = vmatmul.msk.bf16.gmra.mxu2 %vm246_vm0, %v970_v8  ;;  %946 = vmatmul.msk.bf16.gmra.mxu3 %vm246_vm0, %v978_v16 }
  0x25   :  { %923 = vmatmul.msk.bf16.gmra.mxu0 %vm246_vm0, %v955_v6  ;;  %931 = vmatmul.msk.bf16.gmra.mxu1 %vm246_vm0, %v963_v7 }
  0x26   :  { %939 = vmatmul.msk.bf16.gmra.mxu2 %vm246_vm0, %v971_v11  ;;  %947 = vmatmul.msk.bf16.gmra.mxu3 %vm246_vm0, %v979_v20 }
  0x35   :  { %924 = vmatmul.msk.bf16.gmra.mxu0 %vm246_vm0, %v956_v9  ;;  %932 = vmatmul.msk.bf16.gmra.mxu1 %vm246_vm0, %v964_v10 }
  0x36   :  { %940 = vmatmul.msk.bf16.gmra.mxu2 %vm246_vm0, %v972_v15  ;;  %948 = vmatmul.msk.bf16.gmra.mxu3 %vm246_vm0, %v980_v24 }
  0x45   :  { %925 = vmatmul.msk.bf16.gmra.mxu0 %vm246_vm0, %v957_v13  ;;  %933 = vmatmul.msk.bf16.gmra.mxu1 %vm246_vm0, %v965_v14 }
  0x46   :  { %941 = vmatmul.msk.bf16.gmra.mxu2 %vm246_vm0, %v973_v19  ;;  %949 = vmatmul.msk.bf16.gmra.mxu3 %vm246_vm0, %v981_v28 }
  0x55   :  { %926 = vmatmul.msk.bf16.gmra.mxu0 %vm246_vm0, %v958_v17  ;;  %934 = vmatmul.msk.bf16.gmra.mxu1 %vm246_vm0, %v966_v18 }
  0x56   :  { %942 = vmatmul.msk.bf16.gmra.mxu2 %vm246_vm0, %v974_v23  ;;  %950 = vmatmul.msk.bf16.gmra.mxu3 %vm246_vm0, %v982_v32 }
  0x65   :  { %927 = vmatmul.msk.bf16.gmra.mxu0 %vm246_vm0, %v959_v21  ;;  %935 = vmatmul.msk.bf16.gmra.mxu1 %vm246_vm0, %v967_v22 }
  0x66   :  { %943 = vmatmul.msk.bf16.gmra.mxu2 %vm246_vm0, %v975_v27  ;;  %951 = vmatmul.msk.bf16.gmra.mxu3 %vm246_vm0, %v983_v44 }
  0x75   :  { %928 = vmatmul.msk.bf16.gmra.mxu0 %vm246_vm0, %v960_v25  ;;  %936 = vmatmul.msk.bf16.gmra.mxu1 %vm246_vm0, %v968_v26 }
  0x76   :  { %944 = vmatmul.msk.bf16.gmra.mxu2 %vm246_vm0, %v976_v31  ;;  %952 = vmatmul.msk.bf16.gmra.mxu3 %vm246_vm0, %v984_v57 }
  0x82   :  { %v352_v29 = vpop.f32.mrf.mxu0  ;;  %v1126_v30 = vpop.f32.mrf.mxu1 }
  0x83   :  { %512 = vst [vmem:[%s1639_s2] sm:$0xff] %v352_v29  ;;  %v647_v35 = vmul.f32 %v352_v29, %v352_v29 }
  0x84   :  { %528 = vst [vmem:[%s1639_s2 + $0x80] sm:$0xff] %v1126_v30 }
  0x89   :  { %v1170_v49 = vpop.f32.mrf.mxu2  ;;  %v1240_v3 = vpop.f32.mrf.mxu3 }
  0x8a   :  { %v354_v33 = vpop.f32.mrf.mxu0  ;;  %v1143_v34 = vpop.f32.mrf.mxu1  ;;  %544 = vst [vmem:[%s1639_s2 + $0x100] sm:$0xff] %v1170_v49 }
  0x8b   :  { %513 = vst [vmem:[%s1639_s2 + $0x8] sm:$0xff] %v354_v33  ;;  %v577_v36 = vadd.f32 %v354_v33, %v352_v29  ;;  %v648_v37 = vmul.f32 %v354_v33, %v354_v33 }
  0x8c   :  { %529 = vst [vmem:[%s1639_s2 + $0x88] sm:$0xff] %v1143_v34 }
  0x8d   :  { %v711_v38 = vadd.f32 %v648_v37, %v647_v35  ;;  %560 = vst [vmem:[%s1639_s2 + $0x180] sm:$0xff] %v1240_v3 }
  0x91   :  { %v1187_v55 = vpop.f32.mrf.mxu2  ;;  %v1261_v7 = vpop.f32.mrf.mxu3 }
  0x92   :  { %v357_v39 = vpop.f32.mrf.mxu0  ;;  %v1152_v40 = vpop.f32.mrf.mxu1  ;;  %545 = vst [vmem:[%s1639_s2 + $0x108] sm:$0xff] %v1187_v55 }
  0x93   :  { %514 = vst [vmem:[%s1639_s2 + $0x10] sm:$0xff] %v357_v39  ;;  %v578_v41 = vadd.f32 %v577_v36, %v357_v39  ;;  %v649_v42 = vmul.f32 %v357_v39, %v357_v39 }
  0x94   :  { %530 = vst [vmem:[%s1639_s2 + $0x90] sm:$0xff] %v1152_v40 }
  0x95   :  { %v712_v43 = vadd.f32 %v711_v38, %v649_v42  ;;  %561 = vst [vmem:[%s1639_s2 + $0x188] sm:$0xff] %v1261_v7 }
  0x99   :  { %v1208_v60 = vpop.f32.mrf.mxu2  ;;  %v1282_v11 = vpop.f32.mrf.mxu3 }
  0x9a   :  { %v359_v45 = vpop.f32.mrf.mxu0  ;;  %v1165_v46 = vpop.f32.mrf.mxu1  ;;  %546 = vst [vmem:[%s1639_s2 + $0x110] sm:$0xff] %v1208_v60 }
  0x9b   :  { %515 = vst [vmem:[%s1639_s2 + $0x18] sm:$0xff] %v359_v45  ;;  %v579_v47 = vadd.f32 %v578_v41, %v359_v45  ;;  %v650_v48 = vmul.f32 %v359_v45, %v359_v45 }
  0x9c   :  { %531 = vst [vmem:[%s1639_s2 + $0x98] sm:$0xff] %v1165_v46 }
  0x9d   :  { %v713_v50 = vadd.f32 %v712_v43, %v650_v48  ;;  %562 = vst [vmem:[%s1639_s2 + $0x190] sm:$0xff] %v1282_v11 }
  0xa1   :  { %v1223_v63 = vpop.f32.mrf.mxu2  ;;  %v1303_v15 = vpop.f32.mrf.mxu3 }
  0xa2   :  { %v362_v51 = vpop.f32.mrf.mxu0  ;;  %v1180_v52 = vpop.f32.mrf.mxu1  ;;  %547 = vst [vmem:[%s1639_s2 + $0x118] sm:$0xff] %v1223_v63 }
  0xa3   :  { %516 = vst [vmem:[%s1639_s2 + $0x20] sm:$0xff] %v362_v51  ;;  %v1185_v53 = vadd.f32 %v579_v47, %v362_v51  ;;  %v651_v54 = vmul.f32 %v362_v51, %v362_v51 }
  0xa4   :  { %532 = vst [vmem:[%s1639_s2 + $0xa0] sm:$0xff] %v1180_v52 }
  0xa5   :  { %v1193_v56 = vadd.f32 %v713_v50, %v651_v54  ;;  %563 = vst [vmem:[%s1639_s2 + $0x198] sm:$0xff] %v1303_v15 }
  0xa9   :  { %v1238_v2 = vpop.f32.mrf.mxu2  ;;  %v1324_v19 = vpop.f32.mrf.mxu3 }
  0xaa   :  { %v364_v58 = vpop.f32.mrf.mxu0  ;;  %v1203_v59 = vpop.f32.mrf.mxu1  ;;  %548 = vst [vmem:[%s1639_s2 + $0x120] sm:$0xff] %v1238_v2 }
  0xab   :  { %517 = vst [vmem:[%s1639_s2 + $0x28] sm:$0xff] %v364_v58  ;;  %v652_v24 = vmul.f32 %v364_v58, %v364_v58  ;;  %v581_v25 = vadd.f32 %v1185_v53, %v364_v58 }
  0xac   :  { %533 = vst [vmem:[%s1639_s2 + $0xa8] sm:$0xff] %v1203_v59 }
  0xad   :  { %564 = vst [vmem:[%s1639_s2 + $0x1a0] sm:$0xff] %v1324_v19  ;;  %v715_v27 = vadd.f32 %v1193_v56, %v652_v24 }
  0xb1   :  { %v1259_v6 = vpop.f32.mrf.mxu2  ;;  %v1345_v23 = vpop.f32.mrf.mxu3 }
  0xb2   :  { %v367_v61 = vpop.f32.mrf.mxu0  ;;  %v1218_v62 = vpop.f32.mrf.mxu1  ;;  %549 = vst [vmem:[%s1639_s2 + $0x128] sm:$0xff] %v1259_v6 }
  0xb3   :  { %518 = vst [vmem:[%s1639_s2 + $0x30] sm:$0xff] %v367_v61  ;;  %v653_v26 = vmul.f32 %v367_v61, %v367_v61  ;;  %v582_v28 = vadd.f32 %v581_v25, %v367_v61 }
  0xb4   :  { %534 = vst [vmem:[%s1639_s2 + $0xb0] sm:$0xff] %v1218_v62 }
  0xb5   :  { %565 = vst [vmem:[%s1639_s2 + $0x1a8] sm:$0xff] %v1345_v23  ;;  %v716_v33 = vadd.f32 %v715_v27, %v653_v26 }
  0xb9   :  { %v1280_v10 = vpop.f32.mrf.mxu2  ;;  %v1368_v38 = vpop.f32.mrf.mxu3 }
  0xba   :  { %v369_v0 = vpop.f32.mrf.mxu0  ;;  %v1233_v1 = vpop.f32.mrf.mxu1  ;;  %550 = vst [vmem:[%s1639_s2 + $0x130] sm:$0xff] %v1280_v10 }
  0xbb   :  { %519 = vst [vmem:[%s1639_s2 + $0x38] sm:$0xff] %v369_v0  ;;  %v654_v29 = vmul.f32 %v369_v0, %v369_v0  ;;  %v583_v35 = vadd.f32 %v582_v28, %v369_v0 }
  0xbc   :  { %535 = vst [vmem:[%s1639_s2 + $0xb8] sm:$0xff] %v1233_v1 }
  0xbd   :  { %v717_v39 = vadd.f32 %v716_v33, %v654_v29  ;;  %566 = vst [vmem:[%s1639_s2 + $0x1b0] sm:$0xff] %v1368_v38 }
  0xc1   :  { %v1301_v14 = vpop.f32.mrf.mxu2  ;;  %v1389_v61 = vpop.f32.mrf.mxu3 }
  0xc2   :  { %v372_v4 = vpop.f32.mrf.mxu0  ;;  %v1254_v5 = vpop.f32.mrf.mxu1  ;;  %551 = vst [vmem:[%s1639_s2 + $0x138] sm:$0xff] %v1301_v14 }
  0xc3   :  { %520 = vst [vmem:[%s1639_s2 + $0x40] sm:$0xff] %v372_v4  ;;  %v655_v36 = vmul.f32 %v372_v4, %v372_v4  ;;  %v584_v41 = vadd.f32 %v583_v35, %v372_v4 }
  0xc4   :  { %536 = vst [vmem:[%s1639_s2 + $0xc0] sm:$0xff] %v1254_v5 }
  0xc5   :  { %v718_v43 = vadd.f32 %v717_v39, %v655_v36  ;;  %567 = vst [vmem:[%s1639_s2 + $0x1b8] sm:$0xff] %v1389_v61 }
  0xc9   :  { %v1322_v18 = vpop.f32.mrf.mxu2  ;;  %v1410_v36 = vpop.f32.mrf.mxu3 }
  0xca   :  { %v374_v8 = vpop.f32.mrf.mxu0  ;;  %v1275_v9 = vpop.f32.mrf.mxu1  ;;  %552 = vst [vmem:[%s1639_s2 + $0x140] sm:$0xff] %v1322_v18 }
  0xcb   :  { %521 = vst [vmem:[%s1639_s2 + $0x48] sm:$0xff] %v374_v8  ;;  %v656_v42 = vmul.f32 %v374_v8, %v374_v8  ;;  %v585_v44 = vadd.f32 %v584_v41, %v374_v8 }
  0xcc   :  { %537 = vst [vmem:[%s1639_s2 + $0xc8] sm:$0xff] %v1275_v9 }
  0xcd   :  { %v719_v47 = vadd.f32 %v718_v43, %v656_v42  ;;  %568 = vst [vmem:[%s1639_s2 + $0x1c0] sm:$0xff] %v1410_v36  ;;  %v664_v42 = vmul.f32 %v1143_v34, %v1143_v34 }
  0xd1   :  { %v1343_v22 = vpop.f32.mrf.mxu2 }
  0xd2   :  { %v377_v12 = vpop.f32.mrf.mxu0  ;;  %v1296_v13 = vpop.f32.mrf.mxu1  ;;  %553 = vst [vmem:[%s1639_s2 + $0x148] sm:$0xff] %v1343_v22 }
  0xd3   :  { %522 = vst [vmem:[%s1639_s2 + $0x50] sm:$0xff] %v377_v12  ;;  %v657_v45 = vmul.f32 %v377_v12, %v377_v12  ;;  %v586_v48 = vadd.f32 %v585_v44, %v377_v12 }
  0xd4   :  { %538 = vst [vmem:[%s1639_s2 + $0xd0] sm:$0xff] %v1296_v13 }
  0xd5   :  { %v720_v54 = vadd.f32 %v719_v47, %v657_v45 }
  0xd9   :  { %v1366_v37 = vpop.f32.mrf.mxu2 }
  0xda   :  { %v379_v16 = vpop.f32.mrf.mxu0  ;;  %v1317_v17 = vpop.f32.mrf.mxu1  ;;  %554 = vst [vmem:[%s1639_s2 + $0x150] sm:$0xff] %v1366_v37 }
  0xdb   :  { %523 = vst [vmem:[%s1639_s2 + $0x58] sm:$0xff] %v379_v16  ;;  %v658_v50 = vmul.f32 %v379_v16, %v379_v16  ;;  %v587_v56 = vadd.f32 %v586_v48, %v379_v16  ;;  %v666_v48 = vmul.f32 %v1165_v46, %v1165_v46 }
  0xdc   :  { %539 = vst [vmem:[%s1639_s2 + $0xd8] sm:$0xff] %v1317_v17 }
  0xdd   :  { %v721_v0 = vadd.f32 %v720_v54, %v658_v50 }
  0xe1   :  { %v1387_v58 = vpop.f32.mrf.mxu2 }
  0xe2   :  { %v382_v20 = vpop.f32.mrf.mxu0  ;;  %v1338_v21 = vpop.f32.mrf.mxu1  ;;  %555 = vst [vmem:[%s1639_s2 + $0x158] sm:$0xff] %v1387_v58 }
  0xe3   :  { %524 = vst [vmem:[%s1639_s2 + $0x60] sm:$0xff] %v382_v20  ;;  %v659_v57 = vmul.f32 %v382_v20, %v382_v20  ;;  %v588_v4 = vadd.f32 %v587_v56, %v382_v20  ;;  %v1438_v56 = vpop.f32.mrf.mxu3 }
  0xe4   :  { %540 = vst [vmem:[%s1639_s2 + $0xe0] sm:$0xff] %v1338_v21 }
  0xe5   :  { %v722_v12 = vadd.f32 %v721_v0, %v659_v57  ;;  %569 = vst [vmem:[%s1639_s2 + $0x1c8] sm:$0xff] %v1438_v56 }
  0xe9   :  { %v1408_v35 = vpop.f32.mrf.mxu2 }
  0xea   :  { %v384_v31 = vpop.f32.mrf.mxu0  ;;  %v1361_v32 = vpop.f32.mrf.mxu1  ;;  %556 = vst [vmem:[%s1639_s2 + $0x160] sm:$0xff] %v1408_v35 }
  0xeb   :  { %525 = vst [vmem:[%s1639_s2 + $0x68] sm:$0xff] %v384_v31  ;;  %v660_v8 = vmul.f32 %v384_v31, %v384_v31  ;;  %v589_v16 = vadd.f32 %v588_v4, %v384_v31  ;;  %v663_v31 = vmul.f32 %v1126_v30, %v1126_v30 }
  0xec   :  { %541 = vst [vmem:[%s1639_s2 + $0xe8] sm:$0xff] %v1361_v32 }
  0xed   :  { %v723_v25 = vadd.f32 %v722_v12, %v660_v8  ;;  %v669_v8 = vmul.f32 %v1218_v62, %v1218_v62 }
  0xf1   :  { %v1436_v54 = vpop.f32.mrf.mxu2 }
  0xf2   :  { %v387_v51 = vpop.f32.mrf.mxu0  ;;  %v1382_v53 = vpop.f32.mrf.mxu1  ;;  %557 = vst [vmem:[%s1639_s2 + $0x168] sm:$0xff] %v1436_v54 }
  0xf3   :  { %526 = vst [vmem:[%s1639_s2 + $0x70] sm:$0xff] %v387_v51  ;;  %v661_v24 = vmul.f32 %v387_v51, %v387_v51  ;;  %v590_v26 = vadd.f32 %v589_v16, %v387_v51 }
  0xf4   :  { %542 = vst [vmem:[%s1639_s2 + $0xf0] sm:$0xff] %v1382_v53 }
  0xf5   :  { %v724_v20 = vadd.f32 %v723_v25, %v661_v24 }
  0xfa   :  { %v389_v27 = vpop.f32.mrf.mxu0  ;;  %v1403_v28 = vpop.f32.mrf.mxu1 }
  0xfb   :  { %527 = vst [vmem:[%s1639_s2 + $0x78] sm:$0xff] %v389_v27  ;;  %v591_v29 = vadd.f32 %v590_v26, %v389_v27  ;;  %v662_v33 = vmul.f32 %v389_v27, %v389_v27  ;;  %v1460_v26 = vpop.f32.mrf.mxu2  ;;  %v1462_v27 = vpop.f32.mrf.mxu3 }
  0xfc   :  { %543 = vst [vmem:[%s1639_s2 + $0xf8] sm:$0xff] %v1403_v28 }
  0xfd   :  { %v592_v39 = vadd.f32 %v591_v29, %v1126_v30  ;;  %v725_v41 = vadd.f32 %v724_v20, %v662_v33  ;;  %v665_v30 = vmul.f32 %v1152_v40, %v1152_v40  ;;  %558 = vst [vmem:[%s1639_s2 + $0x170] sm:$0xff] %v1460_v26 }
  0xfe   :  { %570 = vst [vmem:[%s1639_s2 + $0x1d0] sm:$0xff] %v1462_v27 }
  0xff   :  { %v593_v43 = vadd.f32 %v592_v39, %v1143_v34  ;;  %v726_v44 = vadd.f32 %v725_v41, %v663_v31  ;;  %v667_v34 = vmul.f32 %v1180_v52, %v1180_v52  ;;  %v673_v31 = vmul.f32 %v1296_v13, %v1296_v13 }
 0x101   :  { %v594_v45 = vadd.f32 %v593_v43, %v1152_v40  ;;  %v727_v47 = vadd.f32 %v726_v44, %v664_v42 }
 0x103   :  { %v595_v50 = vadd.f32 %v594_v45, %v1165_v46  ;;  %v728_v51 = vadd.f32 %v727_v47, %v665_v30  ;;  %v668_v46 = vmul.f32 %v1203_v59, %v1203_v59  ;;  %v1484_v44 = vpop.f32.mrf.mxu2  ;;  %v1486_v30 = vpop.f32.mrf.mxu3 }
 0x104   :  { %559 = vst [vmem:[%s1639_s2 + $0x178] sm:$0xff] %v1484_v44 }
 0x105   :  { %v596_v40 = vadd.f32 %v595_v50, %v1180_v52  ;;  %v729_v57 = vadd.f32 %v728_v51, %v666_v48  ;;  %v670_v52 = vmul.f32 %v1233_v1, %v1233_v1  ;;  %571 = vst [vmem:[%s1639_s2 + $0x1d8] sm:$0xff] %v1486_v30  ;;  %v676_v48 = vmul.f32 %v1361_v32, %v1361_v32 }
 0x107   :  { %v597_v0 = vadd.f32 %v596_v40, %v1203_v59  ;;  %v730_v4 = vadd.f32 %v729_v57, %v667_v34  ;;  %v671_v59 = vmul.f32 %v1254_v5, %v1254_v5  ;;  %v677_v34 = vmul.f32 %v1382_v53, %v1382_v53 }
 0x108   :  { %v678_v57 = vmul.f32 %v1403_v28, %v1403_v28 }
 0x109   :  { %v731_v12 = vadd.f32 %v730_v4, %v668_v46  ;;  %v598_v16 = vadd.f32 %v597_v0, %v1218_v62 }
 0x10b   :  { %v599_v24 = vadd.f32 %v598_v16, %v1233_v1  ;;  %v732_v25 = vadd.f32 %v731_v12, %v669_v8  ;;  %v672_v1 = vmul.f32 %v1275_v9, %v1275_v9  ;;  %v1508_v46 = vpop.f32.mrf.mxu3 }
 0x10c   :  { %572 = vst [vmem:[%s1639_s2 + $0x1e0] sm:$0xff] %v1508_v46 }
 0x10d   :  { %v600_v62 = vadd.f32 %v599_v24, %v1254_v5  ;;  %v733_v20 = vadd.f32 %v732_v25, %v670_v52  ;;  %v674_v5 = vmul.f32 %v1317_v17, %v1317_v17  ;;  %v682_v24 = vmul.f32 %v1223_v63, %v1223_v63 }
 0x10f   :  { %v601_v29 = vadd.f32 %v600_v62, %v1275_v9  ;;  %v734_v33 = vadd.f32 %v733_v20, %v671_v59  ;;  %v684_v20 = vmul.f32 %v1259_v6, %v1259_v6 }
 0x111   :  { %v602_v39 = vadd.f32 %v601_v29, %v1296_v13  ;;  %v735_v41 = vadd.f32 %v734_v33, %v672_v1  ;;  %v675_v13 = vmul.f32 %v1338_v21, %v1338_v21  ;;  %v685_v29 = vmul.f32 %v1280_v10, %v1280_v10 }
 0x113   :  { %v603_v42 = vadd.f32 %v602_v39, %v1317_v17  ;;  %v736_v43 = vadd.f32 %v735_v41, %v673_v31  ;;  %v686_v39 = vmul.f32 %v1301_v14, %v1301_v14 }
 0x115   :  { %v604_v9 = vadd.f32 %v603_v42, %v1338_v21  ;;  %v737_v45 = vadd.f32 %v736_v43, %v674_v5 }
 0x117   :  { %v738_v17 = vadd.f32 %v737_v45, %v675_v13  ;;  %v605_v47 = vadd.f32 %v604_v9, %v1361_v32  ;;  %v679_v32 = vmul.f32 %v1170_v49, %v1170_v49  ;;  %v689_v13 = vmul.f32 %v1366_v37, %v1366_v37 }
 0x119   :  { %v739_v50 = vadd.f32 %v738_v17, %v676_v48  ;;  %v606_v51 = vadd.f32 %v605_v47, %v1382_v53  ;;  %v680_v53 = vmul.f32 %v1187_v55, %v1187_v55  ;;  %v690_v48 = vmul.f32 %v1387_v58, %v1387_v58 }
 0x11b   :  { %v740_v40 = vadd.f32 %v739_v50, %v677_v34  ;;  %v607_v21 = vadd.f32 %v606_v51, %v1403_v28  ;;  %v681_v28 = vmul.f32 %v1208_v60, %v1208_v60 }
 0x11d   :  { %v608_v0 = vadd.f32 %v607_v21, %v1170_v49  ;;  %v741_v4 = vadd.f32 %v740_v40, %v678_v57  ;;  %v1526_v49 = vpop.f32.mrf.mxu3 }
 0x11e   :  { %573 = vst [vmem:[%s1639_s2 + $0x1e8] sm:$0xff] %v1526_v49 }
 0x11f   :  { %v609_v8 = vadd.f32 %v608_v0, %v1187_v55  ;;  %v742_v12 = vadd.f32 %v741_v4, %v679_v32  ;;  %v683_v55 = vmul.f32 %v1238_v2, %v1238_v2  ;;  %v693_v32 = vmul.f32 %v1460_v26, %v1460_v26 }
 0x121   :  { %v610_v16 = vadd.f32 %v609_v8, %v1208_v60  ;;  %v743_v52 = vadd.f32 %v742_v12, %v680_v53  ;;  %v694_v53 = vmul.f32 %v1484_v44, %v1484_v44  ;;  %v990_v8 = vmov 0.0  }
 0x122   :  { %576 = vst [vmem:[%s1640_s3] sm:$0xff] %v990_v8 }
 0x123   :  { %v611_v25 = vadd.f32 %v610_v16, %v1223_v63  ;;  %v744_v59 = vadd.f32 %v743_v52, %v681_v28 }
 0x125   :  { %v612_v62 = vadd.f32 %v611_v25, %v1238_v2  ;;  %v745_v60 = vadd.f32 %v744_v59, %v682_v24  ;;  %v1544_v2 = vpop.f32.mrf.mxu3  ;;  %v698_v25 = vmul.f32 %v1303_v15, %v1303_v15 }
 0x126   :  { %574 = vst [vmem:[%s1639_s2 + $0x1f0] sm:$0xff] %v1544_v2 }
 0x127   :  { %v613_v1 = vadd.f32 %v612_v62, %v1259_v6  ;;  %v746_v63 = vadd.f32 %v745_v60, %v683_v55  ;;  %v687_v6 = vmul.f32 %v1322_v18, %v1322_v18 }
 0x129   :  { %v747_v33 = vadd.f32 %v746_v63, %v684_v20  ;;  %v614_v31 = vadd.f32 %v613_v1, %v1280_v10  ;;  %v688_v10 = vmul.f32 %v1343_v22, %v1343_v22 }
 0x12b   :  { %v615_v41 = vadd.f32 %v614_v31, %v1301_v14  ;;  %v748_v5 = vadd.f32 %v747_v33, %v685_v29 }
 0x12d   :  { %v616_v42 = vadd.f32 %v615_v41, %v1322_v18  ;;  %v749_v43 = vadd.f32 %v748_v5, %v686_v39  ;;  %v1562_v18 = vpop.f32.mrf.mxu3 }
 0x12e   :  { %575 = vst [vmem:[%s1639_s2 + $0x1f8] sm:$0xff] %v1562_v18 }
 0x12f   :  { %v617_v9 = vadd.f32 %v616_v42, %v1343_v22  ;;  %v750_v14 = vadd.f32 %v749_v43, %v687_v6 }
 0x131   :  { %v618_v45 = vadd.f32 %v617_v9, %v1366_v37  ;;  %v751_v17 = vadd.f32 %v750_v14, %v688_v10  ;;  %v691_v37 = vmul.f32 %v1408_v35, %v1408_v35  ;;  %v706_v10 = vmul.f32 %v1486_v30, %v1486_v30 }
 0x133   :  { %v619_v47 = vadd.f32 %v618_v45, %v1387_v58  ;;  %v752_v50 = vadd.f32 %v751_v17, %v689_v13  ;;  %v692_v58 = vmul.f32 %v1436_v54, %v1436_v54  ;;  %v707_v13 = vmul.f32 %v1508_v46, %v1508_v46 }
 0x134   :  { %v708_v17 = vmul.f32 %v1526_v49, %v1526_v49 }
 0x135   :  { %v753_v22 = vadd.f32 %v752_v50, %v690_v48  ;;  %v620_v51 = vadd.f32 %v619_v47, %v1408_v35  ;;  %v695_v35 = vmul.f32 %v1240_v3, %v1240_v3  ;;  %v709_v48 = vmul.f32 %v1544_v2, %v1544_v2 }
 0x137   :  { %v754_v34 = vadd.f32 %v753_v22, %v691_v37  ;;  %v621_v40 = vadd.f32 %v620_v51, %v1436_v54  ;;  %v710_v22 = vmul.f32 %v1562_v18, %v1562_v18 }
 0x139   :  { %v755_v21 = vadd.f32 %v754_v34, %v692_v58  ;;  %v622_v57 = vadd.f32 %v621_v40, %v1460_v26  ;;  %v696_v26 = vmul.f32 %v1261_v7, %v1261_v7 }
 0x13b   :  { %v756_v0 = vadd.f32 %v755_v21, %v693_v32  ;;  %v623_v4 = vadd.f32 %v622_v57, %v1484_v44  ;;  %v697_v44 = vmul.f32 %v1282_v11, %v1282_v11 }
 0x13d   :  { %v624_v54 = vadd.f32 %v623_v4, %v1240_v3  ;;  %v757_v12 = vadd.f32 %v756_v0, %v694_v53  ;;  %v699_v3 = vmul.f32 %v1324_v19, %v1324_v19 }
 0x13f   :  { %v625_v28 = vadd.f32 %v624_v54, %v1261_v7  ;;  %v758_v16 = vadd.f32 %v757_v12, %v695_v35  ;;  %v700_v7 = vmul.f32 %v1345_v23, %v1345_v23 }
 0x141   :  { %v626_v52 = vadd.f32 %v625_v28, %v1282_v11  ;;  %v759_v24 = vadd.f32 %v758_v16, %v696_v26  ;;  %v701_v11 = vmul.f32 %v1368_v38, %v1368_v38 }
 0x143   :  { %v627_v59 = vadd.f32 %v626_v52, %v1303_v15  ;;  %v760_v55 = vadd.f32 %v759_v24, %v697_v44  ;;  %v702_v15 = vmul.f32 %v1389_v61, %v1389_v61 }
 0x145   :  { %v628_v62 = vadd.f32 %v627_v59, %v1324_v19  ;;  %v761_v60 = vadd.f32 %v760_v55, %v698_v25  ;;  %v703_v19 = vmul.f32 %v1410_v36, %v1410_v36 }
 0x147   :  { %v629_v20 = vadd.f32 %v628_v62, %v1345_v23  ;;  %v762_v1 = vadd.f32 %v761_v60, %v699_v3  ;;  %v704_v23 = vmul.f32 %v1438_v56, %v1438_v56 }
 0x149   :  { %v763_v63 = vadd.f32 %v762_v1, %v700_v7  ;;  %v630_v29 = vadd.f32 %v629_v20, %v1368_v38  ;;  %v705_v38 = vmul.f32 %v1462_v27, %v1462_v27 }
 0x14b   :  { %v631_v33 = vadd.f32 %v630_v29, %v1389_v61  ;;  %v764_v31 = vadd.f32 %v763_v63, %v701_v11 }
 0x14d   :  { %v632_v39 = vadd.f32 %v631_v33, %v1410_v36  ;;  %v765_v41 = vadd.f32 %v764_v31, %v702_v15 }
 0x14f   :  { %v633_v5 = vadd.f32 %v632_v39, %v1438_v56  ;;  %v766_v6 = vadd.f32 %v765_v41, %v703_v19 }
 0x151   :  { %v634_v42 = vadd.f32 %v633_v5, %v1462_v27  ;;  %v767_v43 = vadd.f32 %v766_v6, %v704_v23 }
 0x153   :  { %v635_v61 = vadd.f32 %v634_v42, %v1486_v30  ;;  %v768_v9 = vadd.f32 %v767_v43, %v705_v38 }
 0x155   :  { %v769_v36 = vadd.f32 %v768_v9, %v706_v10  ;;  %v636_v14 = vadd.f32 %v635_v61, %v1508_v46 }
 0x157   :  { %v770_v56 = vadd.f32 %v769_v36, %v707_v13  ;;  %v637_v45 = vadd.f32 %v636_v14, %v1526_v49 }
 0x159   :  { %v771_v27 = vadd.f32 %v770_v56, %v708_v17  ;;  %v638_v47 = vadd.f32 %v637_v45, %v1544_v2 }
 0x15b   :  { %v772_v30 = vadd.f32 %v771_v27, %v709_v48  ;;  %v639_v50 = vadd.f32 %v638_v47, %v1562_v18 }
 0x15d   :  { %v640_v51 = vrot.slane %v639_v50, 4  ;;  %v773_v46 = vadd.f32 %v772_v30, %v710_v22 }
 0x15f   :  { %v641_v37 = vadd.f32 %v640_v51, %v639_v50  ;;  %v774_v34 = vrot.slane %v773_v46, 4 }
 0x161   :  { %v642_v40 = vrot.slane %v641_v37, 2  ;;  %v775_v58 = vadd.f32 %v774_v34, %v773_v46 }
 0x163   :  { %v643_v21 = vadd.f32 %v642_v40, %v641_v37  ;;  %v776_v49 = vrot.slane %v775_v58, 2 }
 0x165   :  { %v644_v57 = vrot.slane %v643_v21, 1  ;;  %v777_v32 = vadd.f32 %v776_v49, %v775_v58 }
 0x167   :  { %v645_v0 = vadd.f32 %v644_v57, %v643_v21  ;;  %v778_v4 = vrot.slane %v777_v32, 1 }
 0x169   :  { %646 = vst [vmem:[%s1640_s3] sm:$0x1] %v645_v0  ;;  %v779_v2 = vadd.f32 %v778_v4, %v777_v32 }
 0x16b   :  { %780 = vst [vmem:[%s1640_s3 + $0x1] sm:$0x1] %v779_v2 }

</bundles_post_ra>
